<compile_context>
chip_gen: v6e
topology: v6e:2x2x1
jax: 0.10.0
libtpu: 0.0.40
codegen_flags: <defaults>
</compile_context>

<pallas_src>
import math
import jax
import jax.numpy as jnp
from jax import lax
from jax.experimental import pallas as pl
from jax.experimental.pallas import tpu as pltpu

# ----- small, TPU-friendly model dims (consistent with the module's __init__) -----
VOCAB = 256
EMBED = 128
NUM_HEADS = 4
HEAD_DIM = 32
HALF_DIM = HEAD_DIM // 2
HD = NUM_HEADS * HEAD_DIM          # == EMBED here
INTER = 2 * EMBED                  # SwiGLU intermediate = hidden * 2
MAX_LEN = 9                        # rotary table length = MAX_LEN - 1 = 8
SEQ = 8
BATCH = 2
NUM_LAYERS = 1
EPS = 1e-5
TILE_B = 1                         # sequences per grid step (grid = BATCH // TILE_B)

F32 = jnp.float32
BF16 = jnp.bfloat16


# ------------------------------ kernel ------------------------------

def llama_fwd_kernel(x_ref, n1_ref, n2_ref, wqkv_ref, wo_ref, wgu_ref, wd_ref,
                     cos_ref, sin_ref, hmask_ref, seg_ref, bias_ref,
                     wout_ref, bout_ref, logits_ref):
    # x_ref:     (R, E) f32        R = TILE_B*SEQ rows of this grid step
    # wqkv_ref:  (E, 5*HD) bf16    [Wq | Wk | Wv | Wq_rot_partner | Wk_rot_partner]
    # wo_ref:    (HD, E) bf16      wgu_ref: (E, 2*INTER) bf16   wd_ref: (INTER, E) bf16
    # cos_ref/sin_ref: (R, HD) f32 interleaved-per-head rotary tables
    # hmask_ref: (H*R, HD) f32     0/1 head-block mask for the stacked K/V tiles
    # seg_ref:   (H*R, H*R) f32    0/1 same-head-block matrix (segmented softmax sums)
    # bias_ref:  (R, H*R) f32      additive causal / same-sequence bias (0 or -1e30)
    # wout_ref:  (E, VOCAB) bf16   bout_ref: (1, VOCAB) bf16
    # logits_ref:(R, VOCAB) bf16
    x = x_ref[...]                                                # (R, E) f32

    # ---- RMSNorm 1 (f32, like the reference) ----
    var = jnp.mean(x * x, axis=-1, keepdims=True)
    xn = n1_ref[...] * (x * lax.rsqrt(var + EPS))
    xb = xn.astype(BF16)                                          # bf16 residual stream

    # ---- fused q / k / v / rotate-partner projection: one wide MXU matmul ----
    qkv = jnp.dot(xb, wqkv_ref[...], preferred_element_type=F32)  # (R, 5*HD) f32
    q = qkv[:, 0 * HD:1 * HD]                                     # 128-lane aligned slices
    k = qkv[:, 1 * HD:2 * HD]
    v = qkv[:, 2 * HD:3 * HD]
    qp = qkv[:, 3 * HD:4 * HD]                                    # x @ (Wq rotate-half partner)
    kp = qkv[:, 4 * HD:5 * HD]

    # ---- interleaved rotary embedding: pure f32 FMAs, exact vs the reference formula ----
    cos = cos_ref[...]
    sin = sin_ref[...]
    q_r = (q * cos + qp * sin).astype(BF16)                       # (R, HD) bf16
    k_r = k * cos + kp * sin                                      # keep f32 for stacking

    # ---- head-stacked K / V: (H*R, HD); row h*R+c holds head-h slice of key row c ----
    hmask = hmask_ref[...]                                        # (H*R, HD) f32 0/1
    k_stack = (jnp.concatenate([k_r] * NUM_HEADS, axis=0) * hmask).astype(BF16)
    v_stack = (jnp.concatenate([v] * NUM_HEADS, axis=0) * hmask).astype(BF16)

    # ---- all heads' scores in ONE matmul + hoisted additive mask ----
    scale = 1.0 / math.sqrt(HEAD_DIM)
    s = lax.dot_general(q_r, k_stack, (((1,), (1,)), ((), ())),
                        preferred_element_type=F32) * scale       # (R, H*R) f32
    s = s + bias_ref[...]                                         # causal / same-seq bias

    # ---- per-head-block softmax (full-row max is a valid stabilizer for every block) ----
    m = jnp.max(s, axis=-1, keepdims=True)
    p = jnp.exp(s - m)                                            # (R, H*R) f32
    denom = jnp.dot(p, seg_ref[...], preferred_element_type=F32)  # per-block sums, broadcast
    p = p * pl.reciprocal(denom, approx=True)

    # ---- all heads' P@V (already head-concatenated) + single fused out-projection ----
    attn = jnp.dot(p.astype(BF16), v_stack, preferred_element_type=F32)      # (R, HD) f32
    attn_proj = jnp.dot(attn.astype(BF16), wo_ref[...], preferred_element_type=F32)

    # residual over the *normalized* activations, rounded to bf16 (matches the reference)
    x1 = xb + attn_proj.astype(BF16)                              # (R, E) bf16

    # ---- RMSNorm 2 (f32) ----
    xf = x1.astype(F32)
    var2 = jnp.mean(xf * xf, axis=-1, keepdims=True)
    x2 = (n2_ref[...] * (xf * lax.rsqrt(var2 + EPS))).astype(BF16)

    # ---- SwiGLU MLP: fused [gate | up] matmul ----
    gu = jnp.dot(x2, wgu_ref[...], preferred_element_type=F32)    # (R, 2*INTER) f32
    gate = gu[:, :INTER]
    up = gu[:, INTER:]
    hact = (jax.nn.silu(gate) * up).astype(BF16)
    ff = jnp.dot(hact, wd_ref[...], preferred_element_type=F32).astype(BF16)
    out = x2 + ff                                                 # bf16 residual (reference)

    # ---- LM head fused into the same kernel (lane-dense 256-wide output) ----
    logits = jnp.dot(out, wout_ref[...], preferred_element_type=F32)
    logits = logits + bout_ref[...].astype(F32)
    logits_ref[...] = logits.astype(BF16)


# ------------------------------ wrapper ------------------------------

def llama_forward(tokens, params, tile_b=TILE_B):
    B, T = tokens.shape
    assert T == SEQ and B % tile_b == 0 and NUM_LAYERS == 1
    R = tile_b * SEQ
    HR = NUM_HEADS * R
    xf = params["embed"][tokens].reshape(B * T, EMBED).astype(F32)   # embedding gather = glue
    n_tiles = B // tile_b

    def rows(last):
        return pl.BlockSpec((R, last), lambda i: (i, 0))

    def fixed(shape):
        return pl.BlockSpec(shape, lambda i: (0,) * len(shape))

    logits = pl.pallas_call(
        llama_fwd_kernel,
        grid=(n_tiles,),
        in_specs=[
            rows(EMBED),                          # x rows for this tile
            fixed((1, EMBED)), fixed((1, EMBED)),  # norm1 / norm2 weights
            fixed((EMBED, 5 * HD)),               # fused qkv(+rope partner) weight
            fixed((HD, EMBED)),                   # out_proj
            fixed((EMBED, 2 * INTER)),            # fused gate|up
            fixed((INTER, EMBED)),                # down_proj
            fixed((R, HD)), fixed((R, HD)),       # cos / sin per-tile tables
            fixed((HR, HD)),                      # head-block stack mask
            fixed((HR, HR)),                      # segmented-softmax ones
            fixed((R, HR)),                       # additive causal bias
            fixed((EMBED, VOCAB)),                # lm head weight
            fixed((1, VOCAB)),                    # lm head bias
        ],
        out_specs=rows(VOCAB),
        out_shape=jax.ShapeDtypeStruct((B * T, VOCAB), BF16),
        compiler_params=pltpu.CompilerParams(
            dimension_semantics=("parallel",)),   # v7x: batch tiles across the 2 TCs
    )(xf, params["norm1_w"], params["norm2_w"], params["w_qkv_aug"],
      params["wo"], params["w_gu"], params["wd"],
      params["cos_t"], params["sin_t"], params["head_mask"], params["seg"],
      params["attn_bias"], params["w_out"], params["b_out"])
    return logits.reshape(B, T, VOCAB)


# ------------------------------ glue (params, rotary tables, masks) ------------------------------

def get_rotary_angles(seqlen, headdim, base=10000.0):
    # mirror the reference's bf16 table construction, then hold the values as f32
    dim_half = headdim // 2
    theta = jnp.arange(dim_half, dtype=F32)
    theta = (1.0 / (base ** (theta / dim_half))).astype(BF16).astype(F32)
    positions = jnp.arange(seqlen, dtype=F32)
    angles = (positions[:, None] * theta[None, :]).astype(BF16).astype(F32)
    cos = jnp.cos(angles).astype(BF16).astype(F32)
    sin = jnp.sin(angles).astype(BF16).astype(F32)
    return cos, sin                                               # (T, HALF_DIM) each


def rope_partner_weight(w):
    # Fold "rotate-half" into the projection: partner col for even dim 2i is -odd col,
    # partner col for odd dim 2i+1 is +even col  =>  x@Wp gives (-x_odd, x_even) pairs exactly.
    E_, _ = w.shape
    w4 = w.reshape(E_, NUM_HEADS, HALF_DIM, 2)
    part = jnp.stack([-w4[..., 1], w4[..., 0]], axis=-1)
    return part.reshape(E_, HD)


def build_params(raw, tile_b=TILE_B):
    R = tile_b * SEQ
    HR = NUM_HEADS * R

    # (T, HALF) -> (R, HD): column h*D + 2i (+1) uses table column i, rows repeat per sequence
    def expand(t):
        t = jnp.repeat(t, 2, axis=-1)             # (T, D)   [c0,c0,c1,c1,...]
        t = jnp.tile(t, (1, NUM_HEADS))           # (T, HD)  head-major
        return jnp.tile(t, (tile_b, 1))           # (R, HD)
    cos_t = expand(raw["cos"])
    sin_t = expand(raw["sin"])

    # head-block structure for the stacked K/V tiles and the segmented softmax
    h_of = jnp.arange(HR) // R                    # head owning stacked row j
    r_of = jnp.arange(HR) % R                     # key row index within the tile
    head_mask = (h_of[:, None] == (jnp.arange(HD) // HEAD_DIM)[None, :]).astype(F32)
    seg = (h_of[:, None] == h_of[None, :]).astype(F32)
    q_idx = jnp.arange(R)
    allowed = ((q_idx[:, None] // SEQ == r_of[None, :] // SEQ) &
               ((r_of[None, :] % SEQ) <= (q_idx[:, None] % SEQ)))
    attn_bias = jnp.where(allowed, 0.0, -1e30).astype(F32)

    return {
        "embed": raw["embed"],
        "norm1_w": jnp.ones((1, EMBED), F32),
        "norm2_w": jnp.ones((1, EMBED), F32),
        "w_qkv_aug": jnp.concatenate(
            [raw["wq"], raw["wk"], raw["wv"],
             rope_partner_weight(raw["wq"]), rope_partner_weight(raw["wk"])], axis=1),
        "wo": raw["wo"],
        "w_gu": jnp.concatenate([raw["wg"], raw["wu"]], axis=1),
        "wd": raw["wd"],
        "w_out": raw["w_out"],
        "b_out": raw["b_out"],
        "cos_t": cos_t,
        "sin_t": sin_t,
        "head_mask": head_mask,
        "seg": seg,
        "attn_bias": attn_bias,
    }


# ------------------------------ pure-JAX reference (for validation) ------------------------------

def llama_forward_ref(tokens, raw):
    # Faithful jnp re-implementation of the PyTorch module's forward (dropout off / eval mode).
    x = raw["embed"][tokens].astype(F32)                          # (B, T, E)
    B, T, _ = x.shape
    var = jnp.mean(x * x, axis=-1, keepdims=True)
    xb = (x * lax.rsqrt(var + EPS)).astype(BF16)                  # norm1 weight = ones

    def lin(a, w):
        return jnp.dot(a.astype(BF16), w, preferred_element_type=F32)

    q = lin(xb, raw["wq"]).reshape(B, T, NUM_HEADS, HEAD_DIM)
    k = lin(xb, raw["wk"]).reshape(B, T, NUM_HEADS, HEAD_DIM)
    v = lin(xb, raw["wv"]).reshape(B, T, NUM_HEADS, HEAD_DIM)

    cos = raw["cos"][None, :, None, :]                            # (1, T, 1, HALF)
    sin = raw["sin"][None, :, None, :]

    def rope(t):
        t1, t2 = t[..., 0::2], t[..., 1::2]
        even = t1 * cos - t2 * sin
        odd = t1 * sin + t2 * cos
        return jnp.stack([even, odd], axis=-1).reshape(t.shape)

    qr = rope(q).astype(BF16)
    kr = rope(k).astype(BF16)
    vb = v.astype(BF16)

    scale = 1.0 / math.sqrt(HEAD_DIM)
    s = jnp.einsum("bqhd,bkhd->bhqk", qr, kr, preferred_element_type=F32) * scale
    causal = jnp.tril(jnp.ones((T, T), bool))
    s = jnp.where(causal[None, None], s, -jnp.inf)
    p = jax.nn.softmax(s, axis=-1)
    attn = jnp.einsum("bhqk,bkhd->bqhd", p.astype(BF16), vb, preferred_element_type=F32)
    attn = attn.reshape(B, T, HD)
    attn_o = jnp.dot(attn.astype(BF16), raw["wo"], preferred_element_type=F32).astype(BF16)

    x1 = xb + attn_o
    xf = x1.astype(F32)
    var2 = jnp.mean(xf * xf, axis=-1, keepdims=True)
    x2 = (xf * lax.rsqrt(var2 + EPS)).astype(BF16)                # norm2 weight = ones

    gate = jnp.dot(x2, raw["wg"], preferred_element_type=F32)
    up = jnp.dot(x2, raw["wu"], preferred_element_type=F32)
    h = (jax.nn.silu(gate) * up).astype(BF16)
    ff = jnp.dot(h, raw["wd"], preferred_element_type=F32).astype(BF16)
    out = x2 + ff

    logits = jnp.dot(out, raw["w_out"], preferred_element_type=F32) + raw["b_out"].astype(F32)
    return logits.astype(BF16)


def linear_init(key, fan_in, fan_out):
    bound = 1.0 / math.sqrt(fan_in)
    return jax.random.uniform(key, (fan_in, fan_out), F32, -bound, bound).astype(BF16)


if __name__ == "__main__":
    key = jax.random.PRNGKey(0)
    keys = jax.random.split(key, 12)

    tokens = jax.random.randint(keys[0], (BATCH, SEQ), 0, VOCAB)
    cos, sin = get_rotary_angles(MAX_LEN - 1, HEAD_DIM)

    b_bound = 1.0 / math.sqrt(EMBED)
    raw = {
        "embed": jax.random.normal(keys[1], (VOCAB, EMBED), dtype=F32),
        "wq": linear_init(keys[2], EMBED, HD),
        "wk": linear_init(keys[3], EMBED, HD),
        "wv": linear_init(keys[4], EMBED, HD),
        "wo": linear_init(keys[5], HD, EMBED),
        "wg": linear_init(keys[6], EMBED, INTER),
        "wu": linear_init(keys[7], EMBED, INTER),
        "wd": linear_init(keys[8], INTER, EMBED),
        "w_out": linear_init(keys[9], EMBED, VOCAB),
        "b_out": jax.random.uniform(keys[10], (1, VOCAB), F32, -b_bound, b_bound).astype(BF16),
        "cos": cos[:SEQ],
        "sin": sin[:SEQ],
    }
    params = build_params(raw, tile_b=TILE_B)

    # TODO(synk): flash_attn_func dropout_p=0.1 is stochastic; omitted (eval-mode equivalence).
    # TODO(synk): CrossEntropyLoss path (labels is not None) not implemented; forward returns logits.
    logits = jax.block_until_ready(llama_forward(tokens, params, tile_b=TILE_B))

    assert logits.shape == (BATCH, SEQ, VOCAB) and logits.dtype == BF16
    assert bool(jnp.all(jnp.isfinite(logits.astype(F32))))

    # validate against the pure-JAX reference of the module
    ref = jax.block_until_ready(llama_forward_ref(tokens, raw))
    max_diff = float(jnp.max(jnp.abs(logits.astype(F32) - ref.astype(F32))))
    assert max_diff < 0.15, f"kernel/reference mismatch: max |diff| = {max_diff}"

    print("KERNEL_OK")
</pallas_src>

<mosaic_0001>
module attributes {stable_mosaic.version = 11 : i64} {
  func.func @llama_fwd_kernel(%arg0: i32, %arg1: memref<8x128xf32, #tpu.memory_space<vmem>>, %arg2: memref<1x128xf32, #tpu.memory_space<vmem>>, %arg3: memref<1x128xf32, #tpu.memory_space<vmem>>, %arg4: memref<128x640xbf16, #tpu.memory_space<vmem>>, %arg5: memref<128x128xbf16, #tpu.memory_space<vmem>>, %arg6: memref<128x512xbf16, #tpu.memory_space<vmem>>, %arg7: memref<256x128xbf16, #tpu.memory_space<vmem>>, %arg8: memref<8x128xf32, #tpu.memory_space<vmem>>, %arg9: memref<8x128xf32, #tpu.memory_space<vmem>>, %arg10: memref<32x128xf32, #tpu.memory_space<vmem>>, %arg11: memref<32x32xf32, #tpu.memory_space<vmem>>, %arg12: memref<8x32xf32, #tpu.memory_space<vmem>>, %arg13: memref<128x256xbf16, #tpu.memory_space<vmem>>, %arg14: memref<1x256xbf16, #tpu.memory_space<vmem>>, %arg15: memref<8x256xbf16, #tpu.memory_space<vmem>>) attributes {dimension_semantics = [#tpu.dimension_semantics<parallel>], iteration_bounds = array<i64: 2>, scalar_prefetch = 0 : i64, scratch_operands = 0 : i64, tpu.core_type = #tpu.core_type<tc>, window_params = [{transform_indices = @transform_0, window_bounds = array<i64: 8, 128>}, {pipeline_mode = #tpu.pipeline_mode<synchronous>, transform_indices = @transform_1, window_bounds = array<i64: 1, 128>}, {pipeline_mode = #tpu.pipeline_mode<synchronous>, transform_indices = @transform_2, window_bounds = array<i64: 1, 128>}, {pipeline_mode = #tpu.pipeline_mode<synchronous>, transform_indices = @transform_3, window_bounds = array<i64: 128, 640>}, {pipeline_mode = #tpu.pipeline_mode<synchronous>, transform_indices = @transform_4, window_bounds = array<i64: 128, 128>}, {pipeline_mode = #tpu.pipeline_mode<synchronous>, transform_indices = @transform_5, window_bounds = array<i64: 128, 512>}, {pipeline_mode = #tpu.pipeline_mode<synchronous>, transform_indices = @transform_6, window_bounds = array<i64: 256, 128>}, {pipeline_mode = #tpu.pipeline_mode<synchronous>, transform_indices = @transform_7, window_bounds = array<i64: 8, 128>}, {pipeline_mode = #tpu.pipeline_mode<synchronous>, transform_indices = @transform_8, window_bounds = array<i64: 8, 128>}, {pipeline_mode = #tpu.pipeline_mode<synchronous>, transform_indices = @transform_9, window_bounds = array<i64: 32, 128>}, {pipeline_mode = #tpu.pipeline_mode<synchronous>, transform_indices = @transform_10, window_bounds = array<i64: 32, 32>}, {pipeline_mode = #tpu.pipeline_mode<synchronous>, transform_indices = @transform_11, window_bounds = array<i64: 8, 32>}, {pipeline_mode = #tpu.pipeline_mode<synchronous>, transform_indices = @transform_12, window_bounds = array<i64: 128, 256>}, {pipeline_mode = #tpu.pipeline_mode<synchronous>, transform_indices = @transform_13, window_bounds = array<i64: 1, 256>}, {transform_indices = @transform_14, window_bounds = array<i64: 8, 256>}]} {
    %c0 = arith.constant 0 : index
    %c0_0 = arith.constant 0 : index
    %0 = vector.load %arg1[%c0, %c0_0] : memref<8x128xf32, #tpu.memory_space<vmem>>, vector<8x128xf32>
    %1 = arith.mulf %0, %0 : vector<8x128xf32>
    %cst = arith.constant dense<0.000000e+00> : vector<8xf32>
    %2 = vector.multi_reduction <add>, %1, %cst [1] : vector<8x128xf32> to vector<8xf32>
    %3 = vector.shape_cast %2 : vector<8xf32> to vector<8x1xf32>
    %cst_1 = arith.constant 1.280000e+02 : f32
    %4 = vector.broadcast %cst_1 : f32 to vector<8x1xf32>
    %5 = arith.divf %3, %4 : vector<8x1xf32>
    %c0_2 = arith.constant 0 : index
    %c0_3 = arith.constant 0 : index
    %6 = vector.load %arg2[%c0_2, %c0_3] : memref<1x128xf32, #tpu.memory_space<vmem>>, vector<1x128xf32>
    %cst_4 = arith.constant 9.99999974E-6 : f32
    %7 = vector.broadcast %cst_4 : f32 to vector<8x1xf32>
    %8 = arith.addf %5, %7 : vector<8x1xf32>
    %9 = math.rsqrt %8 : vector<8x1xf32>
    %10 = vector.broadcast %9 : vector<8x1xf32> to vector<8x128xf32>
    %11 = arith.mulf %0, %10 : vector<8x128xf32>
    %12 = vector.broadcast %6 : vector<1x128xf32> to vector<8x128xf32>
    %13 = arith.mulf %12, %11 : vector<8x128xf32>
    %14 = arith.truncf %13 : vector<8x128xf32> to vector<8x128xbf16>
    %c0_5 = arith.constant 0 : index
    %c0_6 = arith.constant 0 : index
    %15 = vector.load %arg4[%c0_5, %c0_6] : memref<128x640xbf16, #tpu.memory_space<vmem>>, vector<128x640xbf16>
    %cst_7 = arith.constant dense<0.000000e+00> : vector<8x640xf32>
    %16 = tpu.matmul %14, %15, %cst_7 {dimension_numbers = #tpu.dot_dimension_numbers<[1], [0], [0], [1], [0, 0, 1, 1], [], []>} : vector<8x128xbf16>, vector<128x640xbf16>, vector<8x640xf32> -> vector<8x640xf32>
    %17 = vector.extract_strided_slice %16 {offsets = [0, 0], sizes = [8, 128], strides = [1, 1]} : vector<8x640xf32> to vector<8x128xf32>
    %18 = vector.extract_strided_slice %16 {offsets = [0, 128], sizes = [8, 128], strides = [1, 1]} : vector<8x640xf32> to vector<8x128xf32>
    %19 = vector.extract_strided_slice %16 {offsets = [0, 256], sizes = [8, 128], strides = [1, 1]} : vector<8x640xf32> to vector<8x128xf32>
    %20 = vector.extract_strided_slice %16 {offsets = [0, 384], sizes = [8, 128], strides = [1, 1]} : vector<8x640xf32> to vector<8x128xf32>
    %21 = vector.extract_strided_slice %16 {offsets = [0, 512], sizes = [8, 128], strides = [1, 1]} : vector<8x640xf32> to vector<8x128xf32>
    %c0_8 = arith.constant 0 : index
    %c0_9 = arith.constant 0 : index
    %22 = vector.load %arg8[%c0_8, %c0_9] : memref<8x128xf32, #tpu.memory_space<vmem>>, vector<8x128xf32>
    %c0_10 = arith.constant 0 : index
    %c0_11 = arith.constant 0 : index
    %23 = vector.load %arg9[%c0_10, %c0_11] : memref<8x128xf32, #tpu.memory_space<vmem>>, vector<8x128xf32>
    %24 = arith.mulf %17, %22 : vector<8x128xf32>
    %25 = arith.mulf %20, %23 : vector<8x128xf32>
    %26 = arith.addf %24, %25 : vector<8x128xf32>
    %27 = arith.truncf %26 : vector<8x128xf32> to vector<8x128xbf16>
    %28 = arith.mulf %18, %22 : vector<8x128xf32>
    %29 = arith.mulf %21, %23 : vector<8x128xf32>
    %30 = arith.addf %28, %29 : vector<8x128xf32>
    %c0_12 = arith.constant 0 : index
    %c0_13 = arith.constant 0 : index
    %31 = vector.load %arg10[%c0_12, %c0_13] : memref<32x128xf32, #tpu.memory_space<vmem>>, vector<32x128xf32>
    %32 = tpu.concatenate %30, %30, %30, %30 in 0 : vector<8x128xf32>, vector<8x128xf32>, vector<8x128xf32>, vector<8x128xf32> -> vector<32x128xf32>
    %33 = arith.mulf %32, %31 : vector<32x128xf32>
    %34 = arith.truncf %33 : vector<32x128xf32> to vector<32x128xbf16>
    %35 = tpu.concatenate %19, %19, %19, %19 in 0 : vector<8x128xf32>, vector<8x128xf32>, vector<8x128xf32>, vector<8x128xf32> -> vector<32x128xf32>
    %36 = arith.mulf %35, %31 : vector<32x128xf32>
    %37 = arith.truncf %36 : vector<32x128xf32> to vector<32x128xbf16>
    %cst_14 = arith.constant dense<0.000000e+00> : vector<8x32xf32>
    %38 = tpu.matmul %27, %34, %cst_14 {dimension_numbers = #tpu.dot_dimension_numbers<[1], [1], [0], [0], [0, 0, 1, 0], [], []>} : vector<8x128xbf16>, vector<32x128xbf16>, vector<8x32xf32> -> vector<8x32xf32>
    %cst_15 = arith.constant 0.176776692 : f32
    %39 = vector.broadcast %cst_15 : f32 to vector<8x32xf32>
    %40 = arith.mulf %38, %39 : vector<8x32xf32>
    %c0_16 = arith.constant 0 : index
    %c0_17 = arith.constant 0 : index
    %41 = vector.load %arg12[%c0_16, %c0_17] : memref<8x32xf32, #tpu.memory_space<vmem>>, vector<8x32xf32>
    %42 = arith.addf %40, %41 : vector<8x32xf32>
    %cst_18 = arith.constant dense<0xFF800000> : vector<8xf32>
    %43 = vector.multi_reduction <maximumf>, %42, %cst_18 [1] : vector<8x32xf32> to vector<8xf32>
    %44 = vector.shape_cast %43 : vector<8xf32> to vector<8x1xf32>
    %45 = vector.broadcast %44 : vector<8x1xf32> to vector<8x32xf32>
    %46 = arith.subf %42, %45 : vector<8x32xf32>
    %47 = math.exp %46 : vector<8x32xf32>
    %c0_19 = arith.constant 0 : index
    %c0_20 = arith.constant 0 : index
    %48 = vector.load %arg11[%c0_19, %c0_20] : memref<32x32xf32, #tpu.memory_space<vmem>>, vector<32x32xf32>
    %cst_21 = arith.constant dense<0.000000e+00> : vector<8x32xf32>
    %49 = tpu.matmul %47, %48, %cst_21 {dimension_numbers = #tpu.dot_dimension_numbers<[1], [0], [0], [1], [0, 0, 1, 1], [], []>} : vector<8x32xf32>, vector<32x32xf32>, vector<8x32xf32> -> vector<8x32xf32>
    %50 = tpu.reciprocal %49 {approx = true} : vector<8x32xf32> -> vector<8x32xf32>
    %51 = arith.mulf %47, %50 : vector<8x32xf32>
    %52 = arith.truncf %51 : vector<8x32xf32> to vector<8x32xbf16>
    %cst_22 = arith.constant dense<0.000000e+00> : vector<8x128xf32>
    %53 = tpu.matmul %52, %37, %cst_22 {dimension_numbers = #tpu.dot_dimension_numbers<[1], [0], [0], [1], [0, 0, 1, 1], [], []>} : vector<8x32xbf16>, vector<32x128xbf16>, vector<8x128xf32> -> vector<8x128xf32>
    %54 = arith.truncf %53 : vector<8x128xf32> to vector<8x128xbf16>
    %c0_23 = arith.constant 0 : index
    %c0_24 = arith.constant 0 : index
    %55 = vector.load %arg5[%c0_23, %c0_24] : memref<128x128xbf16, #tpu.memory_space<vmem>>, vector<128x128xbf16>
    %cst_25 = arith.constant dense<0.000000e+00> : vector<8x128xf32>
    %56 = tpu.matmul %54, %55, %cst_25 {dimension_numbers = #tpu.dot_dimension_numbers<[1], [0], [0], [1], [0, 0, 1, 1], [], []>} : vector<8x128xbf16>, vector<128x128xbf16>, vector<8x128xf32> -> vector<8x128xf32>
    %57 = arith.truncf %56 : vector<8x128xf32> to vector<8x128xbf16>
    %58 = arith.addf %14, %57 : vector<8x128xbf16>
    %59 = arith.extf %58 : vector<8x128xbf16> to vector<8x128xf32>
    %60 = arith.mulf %59, %59 : vector<8x128xf32>
    %cst_26 = arith.constant dense<0.000000e+00> : vector<8xf32>
    %61 = vector.multi_reduction <add>, %60, %cst_26 [1] : vector<8x128xf32> to vector<8xf32>
    %62 = vector.shape_cast %61 : vector<8xf32> to vector<8x1xf32>
    %cst_27 = arith.constant 1.280000e+02 : f32
    %63 = vector.broadcast %cst_27 : f32 to vector<8x1xf32>
    %64 = arith.divf %62, %63 : vector<8x1xf32>
    %c0_28 = arith.constant 0 : index
    %c0_29 = arith.constant 0 : index
    %65 = vector.load %arg3[%c0_28, %c0_29] : memref<1x128xf32, #tpu.memory_space<vmem>>, vector<1x128xf32>
    %cst_30 = arith.constant 9.99999974E-6 : f32
    %66 = vector.broadcast %cst_30 : f32 to vector<8x1xf32>
    %67 = arith.addf %64, %66 : vector<8x1xf32>
    %68 = math.rsqrt %67 : vector<8x1xf32>
    %69 = vector.broadcast %68 : vector<8x1xf32> to vector<8x128xf32>
    %70 = arith.mulf %59, %69 : vector<8x128xf32>
    %71 = vector.broadcast %65 : vector<1x128xf32> to vector<8x128xf32>
    %72 = arith.mulf %71, %70 : vector<8x128xf32>
    %73 = arith.truncf %72 : vector<8x128xf32> to vector<8x128xbf16>
    %c0_31 = arith.constant 0 : index
    %c0_32 = arith.constant 0 : index
    %74 = vector.load %arg6[%c0_31, %c0_32] : memref<128x512xbf16, #tpu.memory_space<vmem>>, vector<128x512xbf16>
    %cst_33 = arith.constant dense<0.000000e+00> : vector<8x512xf32>
    %75 = tpu.matmul %73, %74, %cst_33 {dimension_numbers = #tpu.dot_dimension_numbers<[1], [0], [0], [1], [0, 0, 1, 1], [], []>} : vector<8x128xbf16>, vector<128x512xbf16>, vector<8x512xf32> -> vector<8x512xf32>
    %76 = vector.extract_strided_slice %75 {offsets = [0, 0], sizes = [8, 256], strides = [1, 1]} : vector<8x512xf32> to vector<8x256xf32>
    %77 = vector.extract_strided_slice %75 {offsets = [0, 256], sizes = [8, 256], strides = [1, 1]} : vector<8x512xf32> to vector<8x256xf32>
    %78 = arith.negf %76 : vector<8x256xf32>
    %79 = math.exp %78 : vector<8x256xf32>
    %cst_34 = arith.constant 1.000000e+00 : f32
    %80 = vector.broadcast %cst_34 : f32 to vector<8x256xf32>
    %81 = arith.addf %80, %79 : vector<8x256xf32>
    %82 = arith.divf %80, %81 : vector<8x256xf32>
    %83 = arith.mulf %76, %82 : vector<8x256xf32>
    %84 = arith.mulf %83, %77 : vector<8x256xf32>
    %85 = arith.truncf %84 : vector<8x256xf32> to vector<8x256xbf16>
    %c0_35 = arith.constant 0 : index
    %c0_36 = arith.constant 0 : index
    %86 = vector.load %arg7[%c0_35, %c0_36] : memref<256x128xbf16, #tpu.memory_space<vmem>>, vector<256x128xbf16>
    %cst_37 = arith.constant dense<0.000000e+00> : vector<8x128xf32>
    %87 = tpu.matmul %85, %86, %cst_37 {dimension_numbers = #tpu.dot_dimension_numbers<[1], [0], [0], [1], [0, 0, 1, 1], [], []>} : vector<8x256xbf16>, vector<256x128xbf16>, vector<8x128xf32> -> vector<8x128xf32>
    %88 = arith.truncf %87 : vector<8x128xf32> to vector<8x128xbf16>
    %89 = arith.addf %73, %88 : vector<8x128xbf16>
    %c0_38 = arith.constant 0 : index
    %c0_39 = arith.constant 0 : index
    %90 = vector.load %arg13[%c0_38, %c0_39] : memref<128x256xbf16, #tpu.memory_space<vmem>>, vector<128x256xbf16>
    %cst_40 = arith.constant dense<0.000000e+00> : vector<8x256xf32>
    %91 = tpu.matmul %89, %90, %cst_40 {dimension_numbers = #tpu.dot_dimension_numbers<[1], [0], [0], [1], [0, 0, 1, 1], [], []>} : vector<8x128xbf16>, vector<128x256xbf16>, vector<8x256xf32> -> vector<8x256xf32>
    %c0_41 = arith.constant 0 : index
    %c0_42 = arith.constant 0 : index
    %92 = vector.load %arg14[%c0_41, %c0_42] : memref<1x256xbf16, #tpu.memory_space<vmem>>, vector<1x256xbf16>
    %93 = arith.extf %92 : vector<1x256xbf16> to vector<1x256xf32>
    %94 = vector.broadcast %93 : vector<1x256xf32> to vector<8x256xf32>
    %95 = arith.addf %91, %94 : vector<8x256xf32>
    %96 = arith.truncf %95 : vector<8x256xf32> to vector<8x256xbf16>
    %c0_43 = arith.constant 0 : index
    %c0_44 = arith.constant 0 : index
    %97 = vector.load %arg15[%c0_43, %c0_44] : memref<8x256xbf16, #tpu.memory_space<vmem>>, vector<8x256xbf16>
    tpu.vector_store %arg15[%c0_43, %c0_44], %96 {strides = array<i32>} : memref<8x256xbf16, #tpu.memory_space<vmem>>, vector<8x256xbf16>,
    return
  }
  func.func @transform_0(%arg0: i32) -> (i32, i32) {
    %c0_i32 = arith.constant 0 : i32
    %c0_i32_0 = arith.constant 0 : i32
    return %arg0, %c0_i32 : i32, i32
  }
  func.func @transform_1(%arg0: i32) -> (i32, i32) {
    %c0_i32 = arith.constant 0 : i32
    %c0_i32_0 = arith.constant 0 : i32
    %c0_i32_1 = arith.constant 0 : i32
    return %c0_i32, %c0_i32_0 : i32, i32
  }
  func.func @transform_2(%arg0: i32) -> (i32, i32) {
    %c0_i32 = arith.constant 0 : i32
    %c0_i32_0 = arith.constant 0 : i32
    %c0_i32_1 = arith.constant 0 : i32
    return %c0_i32, %c0_i32_0 : i32, i32
  }
  func.func @transform_3(%arg0: i32) -> (i32, i32) {
    %c0_i32 = arith.constant 0 : i32
    %c0_i32_0 = arith.constant 0 : i32
    %c0_i32_1 = arith.constant 0 : i32
    return %c0_i32, %c0_i32_0 : i32, i32
  }
  func.func @transform_4(%arg0: i32) -> (i32, i32) {
    %c0_i32 = arith.constant 0 : i32
    %c0_i32_0 = arith.constant 0 : i32
    %c0_i32_1 = arith.constant 0 : i32
    return %c0_i32, %c0_i32_0 : i32, i32
  }
  func.func @transform_5(%arg0: i32) -> (i32, i32) {
    %c0_i32 = arith.constant 0 : i32
    %c0_i32_0 = arith.constant 0 : i32
    %c0_i32_1 = arith.constant 0 : i32
    return %c0_i32, %c0_i32_0 : i32, i32
  }
  func.func @transform_6(%arg0: i32) -> (i32, i32) {
    %c0_i32 = arith.constant 0 : i32
    %c0_i32_0 = arith.constant 0 : i32
    %c0_i32_1 = arith.constant 0 : i32
    return %c0_i32, %c0_i32_0 : i32, i32
  }
  func.func @transform_7(%arg0: i32) -> (i32, i32) {
    %c0_i32 = arith.constant 0 : i32
    %c0_i32_0 = arith.constant 0 : i32
    %c0_i32_1 = arith.constant 0 : i32
    return %c0_i32, %c0_i32_0 : i32, i32
  }
  func.func @transform_8(%arg0: i32) -> (i32, i32) {
    %c0_i32 = arith.constant 0 : i32
    %c0_i32_0 = arith.constant 0 : i32
    %c0_i32_1 = arith.constant 0 : i32
    return %c0_i32, %c0_i32_0 : i32, i32
  }
  func.func @transform_9(%arg0: i32) -> (i32, i32) {
    %c0_i32 = arith.constant 0 : i32
    %c0_i32_0 = arith.constant 0 : i32
    %c0_i32_1 = arith.constant 0 : i32
    return %c0_i32, %c0_i32_0 : i32, i32
  }
  func.func @transform_10(%arg0: i32) -> (i32, i32) {
    %c0_i32 = arith.constant 0 : i32
    %c0_i32_0 = arith.constant 0 : i32
    %c0_i32_1 = arith.constant 0 : i32
    return %c0_i32, %c0_i32_0 : i32, i32
  }
  func.func @transform_11(%arg0: i32) -> (i32, i32) {
    %c0_i32 = arith.constant 0 : i32
    %c0_i32_0 = arith.constant 0 : i32
    %c0_i32_1 = arith.constant 0 : i32
    return %c0_i32, %c0_i32_0 : i32, i32
  }
  func.func @transform_12(%arg0: i32) -> (i32, i32) {
    %c0_i32 = arith.constant 0 : i32
    %c0_i32_0 = arith.constant 0 : i32
    %c0_i32_1 = arith.constant 0 : i32
    return %c0_i32, %c0_i32_0 : i32, i32
  }
  func.func @transform_13(%arg0: i32) -> (i32, i32) {
    %c0_i32 = arith.constant 0 : i32
    %c0_i32_0 = arith.constant 0 : i32
    %c0_i32_1 = arith.constant 0 : i32
    return %c0_i32, %c0_i32_0 : i32, i32
  }
  func.func @transform_14(%arg0: i32) -> (i32, i32) {
    %c0_i32 = arith.constant 0 : i32
    %c0_i32_0 = arith.constant 0 : i32
    return %arg0, %c0_i32 : i32, i32
  }
}

</mosaic_0001>

<bundles_post_ra>
// kernel: tpu_custom_call.1
= control target key start
LH: loop header
LB: loop body
LE: loop exit
PB: predicated region body
PF: predicated region fallthrough
CT: control target
= control target key end

     0   :  { %s3572_s0 = inlined_call_operand.hbm [shape: f32[16,128], index: 0, kind: input, shape index: {}]   ;;  %s3573_s1 = inlined_call_operand.hbm [shape: f32[1,128], index: 1, kind: input, shape index: {}]   ;;  %s3574_s2 = inlined_call_operand.hbm [shape: f32[1,128], index: 2, kind: input, shape index: {}]   ;;  %s3575_s3 = inlined_call_operand.hbm [shape: bf16[128,640], index: 3, kind: input, shape index: {}]   ;;  %s3576_s4 = inlined_call_operand.hbm [shape: bf16[128,128], index: 4, kind: input, shape index: {}]   ;;  %s3577_s5 = inlined_call_operand.hbm [shape: bf16[128,512], index: 5, kind: input, shape index: {}]   ;;  %s3578_s6 = inlined_call_operand.hbm [shape: bf16[256,128], index: 6, kind: input, shape index: {}]   ;;  %s3579_s7 = inlined_call_operand.vmem [shape: f32[8,128], index: 7, kind: input, shape index: {}]   ;;  %s3580_s8 = inlined_call_operand.hbm [shape: f32[8,128], index: 8, kind: input, shape index: {}]   ;;  %s3581_s9 = inlined_call_operand.hbm [shape: f32[32,128], index: 9, kind: input, shape index: {}]   ;;  %s3582_s10 = inlined_call_operand.hbm [shape: f32[32,32], index: 10, kind: input, shape index: {}]   ;;  %s3583_s11 = inlined_call_operand.vmem [shape: f32[8,32], index: 11, kind: input, shape index: {}]   ;;  %s3584_s12 = inlined_call_operand.hbm [shape: bf16[128,256], index: 12, kind: input, shape index: {}]   ;;  %s3585_s13 = inlined_call_operand.vmem [shape: bf16[1,256], index: 13, kind: input, shape index: {}]   ;;  %s3586_s14 = inlined_call_operand.hbm [shape: bf16[16,256], index: 14, kind: output, shape index: {}]  }
   0x1   :  { %3596 = sst [smem:[#allocation28_spill]] %s3573_s1 }
   0x2   :  { %3597 = sst [smem:[#allocation29_spill]] %s3574_s2 }
   0x3   :  { %3598 = sst [smem:[#allocation30_spill]] %s3575_s3 }
   0x4   :  { %3599 = sst [smem:[#allocation31_spill]] %s3576_s4 }
   0x5   :  { %3600 = sst [smem:[#allocation32_spill]] %s3577_s5 }
   0x6   :  { %3601 = sst [smem:[#allocation33_spill]] %s3578_s6 }
   0x7   :  { %3602 = sst [smem:[#allocation34_spill]] %s3580_s8 }
   0x8   :  { %3603 = sst [smem:[#allocation35_spill]] %s3581_s9 }
   0x9   :  { %3604 = sst [smem:[#allocation36_spill]] %s3586_s14 }
   0xa   :  { %19 = vsyncpa [#allocation3], 0 }
   0xb   :  { %21 = vsyncpa [#allocation3 + $0x1], 0 }
   0xc   :  { %22 = vsyncpa [#allocation6], 0 }
   0xd   :  { %23 = vsyncpa [#allocation9], 0 }
   0xe   :  { %24 = vsyncpa [#allocation12], 0 }
   0xf   :  { %25 = vsyncpa [#allocation15], 0 }
  0x10   :  { %26 = vsyncpa [#allocation18], 0 }
  0x11   :  { %27 = vsyncpa [#allocation4], 0 }
  0x12   :  { %29 = vsyncpa [#allocation4 + $0x1], 0  ;;  %s3220_s29 = smov 0   ;;  %s3222_s30 = smov 0  }
  0x13   :  { %s3224_s15 = smov 0   ;;  %s3226_s16 = smov 0  }
  0x14 LB: > { %s3122_s17 = smov [#allocation5]   ;;  %s3241_s19 = sadd.s32 4294967295, %s3120_s16   ;;  %s3120_s16 = sphi %s3226_s16, %s3643_s16   ;;  %s3116_s15 = sphi %s3224_s15, %s3642_s15   ;;  %s3112_s30 = sphi %s3222_s30, %s3641_s30   ;;  %s3108_s29 = sphi %s3220_s29, %s3640_s29  }
  0x15   : > { %s378_s18 = sshll.u32 %s3122_s17, 4  ;;  %p2151_p0 = scmp.ge.s32.totalorder %s3120_s16, 1  ;;  %s379_s18 = int_to_ptr.vmem [resolvable:$true] %s378_s18 }
  0x16   : > { %p3592_p1 = scmp.eq.s32.totalorder %s3241_s19, 0  ;;  %p365_p2 = scmp.lt.s32.totalorder %s3120_s16, 3 }
  0x17   : > { %s3123_s21 = smov [#allocation8]   ;;  %s3124_s24 = smov [#allocation11]  }
  0x18   : > { %p3246_p3 = pnand %p2151_p0, %p365_p2  ;;  %s399_s22 = sshll.u32 %s3123_s21, 4  ;;  %s3253_s22 = int_to_ptr.vmem [resolvable:$true] %s399_s22 }
  0x19   : > { %s425_s25 = sshll.u32 %s3124_s24, 4  ;;  %s2759_s27 = scalar_lea.vmem %s379_s18, 16  ;;  %s3261_s25 = int_to_ptr.vmem [resolvable:$true] %s425_s25 }
  0x1a   : > { %s3605_s20 = scalar_select %p3246_p3, 1, 0 }
  0x1b   : > { %p2466_p5 = pneg %p3246_p3  ;;  %p2760_p8 = scmp.ne.s32.totalorder %s379_s18, %s2759_s27 }
  0x1c   : > { %s2766_s28 = scalar_lea.vmem %s379_s18, 32  ;;  %p2767_p11 = scmp.lt.s32.totalorder %s379_s18, %s379_s18 }
  0x1d   : > { %p3257_p6 = pnand %p2466_p5, %p3592_p1  ;;  %p2768_p12 = scmp.lt.s32.totalorder %s2766_s28, %s2759_s27 }
  0x1f   : > { %p3265_p7 = pneg %p3257_p6  ;;  %p2769_p13 = por %p2768_p12, %p2767_p11 }
  0x21   : > { %p2762_p9 = pnand %p2760_p8, %p3265_p7 }
  0x23   : > { %p2763_p10 = pneg %p2762_p9 }
  0x25   : > { %p2770_p0 = pnand %p2769_p13, %p2763_p10 }
  0x27   : > { %2773 = shalt.err (!%p2770_p0)
}
  0x28   : > { %s3608_s1 = sld [smem:[#allocation28_spill]]  ;;  %s2785_s24 = scalar_lea.vmem %s3253_s22, 5120 }
  0x29   : > { %p2786_p2 = scmp.ne.s32.totalorder %s3253_s22, %s2785_s24  ;;  %p2793_p9 = scmp.lt.s32.totalorder %s3253_s22, %s3253_s22 }
  0x2a   : > { %p2794_p11 = scmp.lt.s32.totalorder %s2785_s24, %s2785_s24 }
  0x2b   : > { %p2788_p5 = pnand %p2786_p2, %p3265_p7 }
  0x2c   : > { %p2795_p10 = por %p2794_p11, %p2793_p9 }
  0x2d   : > { %p2789_p8 = pneg %p2788_p5 }
  0x2e   : > { %2469 = dma.hbm_to_vmem [thread:$0]  (!%p3257_p6), %s3608_s1, 16, %s379_s18, [#allocation6]  }
  0x2f   : > { %p2796_p12 = pnand %p2795_p10, %p2789_p8 }
  0x31   : > { %2799 = shalt.err (!%p2796_p12)
}
  0x32   : > { %s3125_s27 = smov 320   ;;  %s3126_s28 = smov 20  }
  0x33   : > { %s3609_s3 = sld [smem:[#allocation30_spill]]  ;;  %s2811_s21 = scalar_lea.vmem %s3261_s25, 4096 }
  0x34   : > { %p2812_p13 = scmp.ne.s32.totalorder %s3261_s25, %s2811_s21  ;;  %p2819_p5 = scmp.lt.s32.totalorder %s3261_s25, %s3261_s25 }
  0x35   : > { %p2820_p8 = scmp.lt.s32.totalorder %s2811_s21, %s2811_s21 }
  0x36   : > { %p2814_p0 = pnand %p2812_p13, %p3265_p7 }
  0x37   : > { %p2821_p9 = por %p2820_p8, %p2819_p5 }
  0x38   : > { %p2815_p2 = pneg %p2814_p0 }
  0x39   : > { %2475 = dma.hbm_to_vmem [thread:$0]  (!%p3257_p6), %s3609_s3, 5120, %s3253_s22, [#allocation9], %s3125_s27, %s3125_s27, %s3126_s28  }
  0x3a   : > { %p2822_p11 = pnand %p2821_p9, %p2815_p2 }
  0x3c   : > { %2825 = shalt.err (!%p2822_p11)
}
  0x3d   : > { %s3127_s24 = smov 256   ;;  %s3128_s1 = smov 16  }
  0x3e   : > { %s3610_s5 = sld [smem:[#allocation32_spill]]  ;;  %s3129_s22 = smov [#allocation14]  }
  0x3f   : > { %s455_s27 = sshll.u32 %s3129_s22, 4  ;;  %s456_s27 = int_to_ptr.vmem [resolvable:$true] %s455_s27 }
  0x40   : > { %s2837_s28 = scalar_lea.vmem %s456_s27, 128  ;;  %p2845_p0 = scmp.lt.s32.totalorder %s456_s27, %s456_s27 }
  0x41   : > { %p2838_p10 = scmp.ne.s32.totalorder %s456_s27, %s2837_s28  ;;  %p2846_p2 = scmp.lt.s32.totalorder %s2837_s28, %s2837_s28 }
  0x43   : > { %p2840_p12 = pnand %p2838_p10, %p3265_p7  ;;  %p2847_p5 = por %p2846_p2, %p2845_p0 }
  0x44   : > { %2481 = dma.hbm_to_vmem [thread:$0]  (!%p3257_p6), %s3610_s5, 4096, %s3261_s25, [#allocation12], %s3127_s24, %s3127_s24, %s3128_s1  }
  0x45   : > { %p2841_p13 = pneg %p2840_p12 }
  0x47   : > { %p2848_p8 = pnand %p2847_p5, %p2841_p13 }
  0x49   : > { %2851 = shalt.err (!%p2848_p8)
}
  0x4a   : > { %s3611_s8 = sld [smem:[#allocation34_spill]]  ;;  %s3130_s1 = smov [#allocation17]  }
  0x4b   : > { %s478_s14 = sshll.u32 %s3130_s1, 4  ;;  %s3131_s25 = smov [#allocation7]   ;;  %s479_s14 = int_to_ptr.vmem [resolvable:$true] %s478_s14 }
  0x4c   : > { %s389_s24 = sshll.u32 %s3131_s25, 4  ;;  %s2863_s18 = scalar_lea.vmem %s479_s14, 512  ;;  %s390_s24 = int_to_ptr.vmem [resolvable:$true] %s389_s24 }
  0x4d   : > { %p2864_p9 = scmp.ne.s32.totalorder %s479_s14, %s2863_s18  ;;  %p2871_p12 = scmp.lt.s32.totalorder %s479_s14, %s479_s14 }
  0x4e   : > { %p2872_p13 = scmp.lt.s32.totalorder %s2863_s18, %s2863_s18 }
  0x4f   : > { %p2866_p11 = pnand %p2864_p9, %p3265_p7 }
  0x50   : > { %2487 = dma.hbm_to_vmem [thread:$0]  (!%p3257_p6), %s3611_s8, 128, %s456_s27, [#allocation15]  }
  0x51   : > { %p2867_p10 = pneg %p2866_p11  ;;  %p2873_p0 = por %p2872_p13, %p2871_p12 }
  0x53   : > { %p2874_p2 = pnand %p2873_p0, %p2867_p10 }
  0x55   : > { %2877 = shalt.err (!%p2874_p2)
}
  0x56   : > { %s3588_s22 = smov 128   ;;  %s3590_s27 = smov 8  }
  0x57   : > { %2493 = dma.hbm_to_vmem [thread:$0]  (!%p3257_p6), %s3582_s10, 512, %s479_s14, [#allocation18], %s3588_s22, %s3588_s22, %s3590_s27  }
  0x58   : > { %s2889_s21 = scalar_lea.vmem %s390_s24, 16  ;;  %s2896_s1 = scalar_lea.vmem %s390_s24, 32 }
  0x59   : > { %p2890_p5 = scmp.ne.s32.totalorder %s390_s24, %s2889_s21  ;;  %p2897_p11 = scmp.lt.s32.totalorder %s390_s24, %s390_s24 }
  0x5a   : > { %p2898_p10 = scmp.lt.s32.totalorder %s2896_s1, %s2889_s21 }
  0x5b   : > { %p2892_p8 = pnand %p2890_p5, %p3265_p7 }
  0x5c   : > { %p2899_p12 = por %p2898_p10, %p2897_p11 }
  0x5d   : > { %p2893_p9 = pneg %p2892_p8 }
  0x5f   : > { %p2900_p13 = pnand %p2899_p12, %p2893_p9 }
  0x61   : > { %2903 = shalt.err (!%p2900_p13)
}
  0x62   : > { %s3612_s2 = sld [smem:[#allocation29_spill]]  ;;  %s3134_s28 = smov [#allocation10]  }
  0x63   : > { %s412_s14 = sshll.u32 %s3134_s28, 4  ;;  %s413_s14 = int_to_ptr.vmem [resolvable:$true] %s412_s14 }
  0x64   : > { %s2915_s17 = scalar_lea.vmem %s413_s14, 1024  ;;  %p2923_p8 = scmp.lt.s32.totalorder %s413_s14, %s413_s14 }
  0x65   : > { %p2916_p0 = scmp.ne.s32.totalorder %s413_s14, %s2915_s17  ;;  %p2924_p4 = scmp.lt.s32.totalorder %s2915_s17, %s2915_s17 }
  0x67   : > { %p2918_p2 = pnand %p2916_p0, %p3265_p7  ;;  %p2925_p11 = por %p2924_p4, %p2923_p8 }
  0x68   : > { %2472 = dma.hbm_to_vmem [thread:$0]  (!%p3257_p6), %s3612_s2, 16, %s390_s24, [#allocation6]  }
  0x69   : > { %p2919_p5 = pneg %p2918_p2 }
  0x6b   : > { %p2926_p9 = pnand %p2925_p11, %p2919_p5 }
  0x6d   : > { %2929 = shalt.err (!%p2926_p9)
}
  0x6e   : > { %s3135_s21 = smov 64   ;;  %s3136_s1 = smov 4  }
  0x6f   : > { %s3613_s4 = sld [smem:[#allocation31_spill]]  ;;  %s3137_s18 = smov [#allocation13]  }
  0x70   : > { %s438_s28 = sshll.u32 %s3137_s18, 4  ;;  %s3138_s22 = smov [#allocation16]   ;;  %s439_s28 = int_to_ptr.vmem [resolvable:$true] %s438_s28 }
  0x71   : > { %s465_s27 = sshll.u32 %s3138_s22, 4  ;;  %s2941_s2 = scalar_lea.vmem %s439_s28, 2048  ;;  %s466_s27 = int_to_ptr.vmem [resolvable:$true] %s465_s27 }
  0x72   : > { %p2942_p10 = scmp.ne.s32.totalorder %s439_s28, %s2941_s2  ;;  %p2949_p13 = scmp.lt.s32.totalorder %s439_s28, %s439_s28 }
  0x73   : > { %p2950_p0 = scmp.lt.s32.totalorder %s2941_s2, %s2941_s2 }
  0x74   : > { %p2944_p4 = pnand %p2942_p10, %p3265_p7 }
  0x75   : > { %2478 = dma.hbm_to_vmem [thread:$0]  (!%p3257_p6), %s3613_s4, 1024, %s413_s14, [#allocation9], %s3135_s21, %s3135_s21, %s3136_s1  }
  0x76   : > { %p2945_p12 = pneg %p2944_p4  ;;  %p2951_p2 = por %p2950_p0, %p2949_p13 }
  0x78   : > { %p2952_p5 = pnand %p2951_p2, %p2945_p12 }
  0x7a   : > { %2955 = shalt.err (!%p2952_p5)
}
  0x7b   : > { %s3614_s6 = sld [smem:[#allocation33_spill]]  ;;  %s2967_s14 = scalar_lea.vmem %s466_s27, 512 }
  0x7c   : > { %p2968_p8 = scmp.ne.s32.totalorder %s466_s27, %s2967_s14  ;;  %p2975_p10 = scmp.lt.s32.totalorder %s466_s27, %s466_s27 }
  0x7d   : > { %p2976_p4 = scmp.lt.s32.totalorder %s2967_s14, %s2967_s14 }
  0x7e   : > { %p2970_p11 = pnand %p2968_p8, %p3265_p7 }
  0x7f   : > { %p2977_p1 = por %p2976_p4, %p2975_p10 }
  0x80   : > { %p2971_p9 = pneg %p2970_p11 }
  0x81   : > { %2484 = dma.hbm_to_vmem [thread:$0]  (!%p3257_p6), %s3614_s6, 2048, %s439_s28, [#allocation12], %s3135_s21, %s3135_s21, %s3136_s1  }
  0x82   : > { %p2978_p3 = pnand %p2977_p1, %p2971_p9 }
  0x84   : > { %2981 = shalt.err (!%p2978_p3)
}
  0x85   : > { %s3615_s2 = smov 8   ;;  %s3616_s22 = smov 128  }
  0x86   : > { %s3617_s9 = sld [smem:[#allocation35_spill]]  ;;  %s3139_s21 = smov [#allocation19]  }
  0x87   : > { %s494_s1 = sshll.u32 %s3139_s21, 4  ;;  %s495_s1 = int_to_ptr.vmem [resolvable:$true] %s494_s1 }
  0x88   : > { %s2993_s28 = scalar_lea.vmem %s495_s1, 2048  ;;  %p3001_p1 = scmp.lt.s32.totalorder %s495_s1, %s495_s1 }
  0x89   : > { %p2994_p12 = scmp.ne.s32.totalorder %s495_s1, %s2993_s28  ;;  %p3002_p3 = scmp.lt.s32.totalorder %s2993_s28, %s2993_s28 }
  0x8b   : > { %p2996_p13 = pnand %p2994_p12, %p3265_p7  ;;  %p3003_p2 = por %p3002_p3, %p3001_p1 }
  0x8c   : > { %2490 = dma.hbm_to_vmem [thread:$0]  (!%p3257_p6), %s3617_s9, 512, %s466_s27, [#allocation15], %s3616_s22, %s3616_s22, %s3615_s2  }
  0x8d   : > { %p2997_p0 = pneg %p2996_p13 }
  0x8f   : > { %p3004_p5 = pnand %p3003_p2, %p2997_p0 }
  0x91   : > { %3007 = shalt.err (!%p3004_p5)
}
  0x92   : > { %2496 = dma.hbm_to_vmem [thread:$0]  (!%p3257_p6), %s3584_s12, 2048, %s495_s1, [#allocation18], %s3616_s22, %s3616_s22, %s3615_s2  }
  0x93   : > { %s2150_s23 = sadd.s32 4294967294, %s3120_s16   ;;  %s3360_s26 = sadd.s32 1, %s3120_s16  }
  0x94   : > { %s39_s25 = ssub.s32 %s3120_s16, %s3360_s26  ;;  %s42_s14 = sadd.s32 1, %s3116_s15 }
  0x95   : > { %p40_p7 = scmp.eq.s32.totalorder %s39_s25, 0  ;;  %p49_p8 = scmp.ne.s32.totalorder %s3116_s15, %s3112_s30 }
  0x96   : > { %p50_p11 = scmp.eq.s32.totalorder %s3120_s16, 0  ;;  %p55_p9 = scmp.ne.s32.totalorder %s3112_s30, %s3108_s29 }
  0x97   : > { %s3371_s24 = scalar_select %p40_p7, %s3116_s15, %s42_s14  }
  0x98   : > { %p3373_p10 = por %p50_p11, %p49_p8  ;;  %p3619_p4 = scmp.eq.s32.totalorder %s3241_s19, 0 }
  0x99   : > { %p352_p12 = scmp.eq.s32.totalorder %s3241_s19, 1  ;;  %p358_p13 = scmp.eq.s32.totalorder %s2150_s23, 1 }
  0x9a   : > { %p3379_p6 = por %p3619_p4, %p55_p9  ;;  %p2515_p0 = scmp.lt.s32.totalorder %s3120_s16, 2 }
  0x9b   : > { %s511_s22 = sand.u32 1, %s3116_s15   ;;  %p3386_p1 = por %p352_p12, %p49_p8 }
  0x9c   : > { %s3620_s2 = scalar_select %p3379_p6, 1, 0 }
  0x9d   : > { %s3621_s21 = scalar_select %p3386_p1, 1, 0 }
  0x9e   : > { %p3390_p3 = por %p358_p13, %p55_p9  ;;  %s2163_s28 = sshll.u32 %s511_s22, 3 }
  0x9f   : > { %s2164_s17 = sshll.u32 %s3120_s16, 7  ;;  %s515_s23 = scalar_lea.vmem [#allocation2], %s2163_s28 }
  0xa0   : > { %s3622_s1 = scalar_select %p3390_p3, 1, 0 }
  0xa1   : > { %s3398_s14 = scalar_lea.hbm %s3572_s0, %s2164_s17  ;;  %s522_s3 = sshll.u32 %s515_s23, 4  ;;  %s523_s3 = int_to_ptr.vmem [resolvable:$true] %s522_s3 }
  0xa2   : > { %p3402_p2 = pnand %p2515_p0, %p3373_p10  ;;  %s512_s5 = scalar_lea.sflag [#allocation3], %s511_s22 }
  0xa3   : > { %s3008_s6 = scalar_lea.hbm %s3398_s14, 128  ;;  %s3013_s25 = scalar_lea.hbm %s3572_s0, 256 }
  0xa4   : > { %p3009_p5 = scmp.ne.s32.totalorder %s3398_s14, %s3008_s6  ;;  %p3010_p7 = pneg %p3402_p2 }
  0xa5   : > { %p3014_p9 = scmp.lt.s32.totalorder %s3398_s14, %s3572_s0  ;;  %p3015_p10 = scmp.lt.s32.totalorder %s3013_s25, %s3008_s6 }
  0xa6   : > { %p3011_p8 = pnand %p3010_p7, %p3009_p5 }
  0xa7   : > { %p3016_p4 = por %p3015_p10, %p3014_p9 }
  0xa8   : > { %p3012_p11 = pneg %p3011_p8 }
  0xaa   : > { %p3017_p12 = pnand %p3016_p4, %p3012_p11 }
  0xac   : > { %3020 = shalt.err (!%p3017_p12)
}
  0xad   : > { %s3021_s18 = scalar_lea.vmem %s523_s3, 128  ;;  %s3140_s22 = smov [#allocation2]  }
  0xae   : > { %p3022_p13 = scmp.ne.s32.totalorder %s523_s3, %s3021_s18  ;;  %s3026_s8 = sshll.u32 %s3140_s22, 4  ;;  %s3027_s8 = int_to_ptr.vmem [resolvable:$false] %s3026_s8 }
  0xaf   : > { %s3028_s9 = scalar_lea.vmem %s3027_s8, 256  ;;  %p3029_p5 = scmp.lt.s32.totalorder %s523_s3, %s3027_s8 }
  0xb0   : > { %p3024_p0 = pnand %p3022_p13, %p3010_p7  ;;  %p3030_p8 = scmp.lt.s32.totalorder %s3028_s9, %s3021_s18 }
  0xb2   : > { %p3025_p3 = pneg %p3024_p0  ;;  %p3031_p1 = por %p3030_p8, %p3029_p5 }
  0xb4   : > { %p3032_p6 = pnand %p3031_p1, %p3025_p3 }
  0xb6   : > { %3035 = shalt.err (!%p3032_p6)
}
  0xb7   : > { %2500 = dma.hbm_to_vmem [thread:$0]  (!%p3402_p2), %s3398_s14, 128, %s523_s3, %s512_s5  }
  0xb8   : > { %p3624_p11 = scmp.ne.s32.totalorder %s3605_s20, 0 }
  0xb9   : > { %s3423_s6 = sand.u32 (!%p3624_p11), 1, %s3112_s30   ;;  %p3625_p1 = scmp.ne.s32.totalorder (!%p3624_p11), %s3620_s2, 0 }
  0xba   : > { %531 = sbr.rel (%p3624_p11) target bundleno = 2391 (0x957), region = 76  ;;  %s2166_s17 = sshll.u32 (!%p3624_p11), %s3423_s6, 3 }
  0xbb   : > { %s534_s8 = scalar_lea.sflag (!%p3624_p11), [#allocation3], %s3423_s6  ;;  %s537_s9 = scalar_lea.vmem (!%p3624_p11), [#allocation2], %s2166_s17 }
  0xbf   : > { %3079 = dma.done.wait (%p3625_p1), %s534_s8, 128  }
  0xc0   : > { %3081 = vsyncadd (%p3625_p1), %s534_s8, 4294967168  ;;  %p3626_p6 = scmp.eq.s32.totalorder %s3241_s19, 0 }
  0xc2   : > { %3083 = dma.done.wait (%p3626_p6), [#allocation6], 32   ;;  %p3627_p3 = pmov %p3626_p6 }
  0xc4   : > { %3085 = vsyncadd (%p3627_p3), [#allocation6], 4294967264  ;;  %p3628_p2 = pmov %p3627_p3 }
  0xc6   : > { %3087 = dma.done.wait (%p3628_p2), [#allocation9], 6144   ;;  %p3629_p7 = pmov %p3628_p2 }
  0xc7   : > { %p3630_p9 = pmov %p3628_p2 }
  0xc8   : > { %3089 = vsyncadd (%p3629_p7), [#allocation9], 4294961152 }
  0xc9   : > { %3091 = dma.done.wait (%p3630_p9), [#allocation12], 6144   ;;  %p3631_p10 = pmov %p3628_p2 }
  0xca   : > { %p3632_p4 = pmov %p3628_p2 }
  0xcb   : > { %3093 = vsyncadd (%p3631_p10), [#allocation12], 4294961152 }
  0xcc   : > { %3095 = dma.done.wait (%p3632_p4), [#allocation15], 640   ;;  %p3633_p12 = pmov %p3628_p2 }
  0xcd   : > { %p3634_p13 = pmov %p3628_p2 }
  0xce   : > { %3097 = vsyncadd (%p3633_p12), [#allocation15], 4294966656 }
  0xcf   : > { %3099 = dma.done.wait (%p3634_p13), [#allocation18], 2560   ;;  %p3635_p0 = pmov %p3628_p2 }
  0xd0   : > { %v3453_v0 = vld [vmem:[%s537_s9] sm:$0xff]  ;;  %v2594_v11 = vld [vmem:[#allocation8 + $0xc8] ss:$20 sps:$4 sm:$0xff]   ;;  %v3141_v29 = vmov 0   ;;  %v3142_v35 = vmov 0.0   ;;  %vm3143_vm0 = vmmov 0  }
  0xd1   : > { %3101 = vsyncadd (%p3635_p0), [#allocation18], 4294964736  ;;  %v624_v1 = vmul.f32 %v3453_v0, %v3453_v0  ;;  %v2580_v2 = vld [vmem:[#allocation8 + $0x11c] ss:$20 sps:$4 sm:$0xff]   ;;  %v2582_v3 = vld [vmem:[#allocation8 + $0x118] ss:$20 sps:$4 sm:$0xff]   ;;  %929 = vmatprep.mubr.bf16.mxu0 %v3141_v29  ;;  %970 = vmatprep.mubr.bf16.mxu1 %v3141_v29 }
  0xd2   : > { %v2583_v4 = vld [vmem:[#allocation8 + $0x124] ss:$20 sps:$4 sm:$0xff]   ;;  %v2585_v5 = vld [vmem:[#allocation8 + $0x120] ss:$20 sps:$4 sm:$0xff]   ;;  %897 = vmatprep.subr.bf16.mxu0 %v2580_v2  ;;  %v2589_v8 = vld [vmem:[#allocation8 + $0xfc] ss:$20 sps:$4 sm:$0xff]  }
  0xd3   : > { %625 = vadd.xlane.f32.xlu0 %v624_v1  ;;  %v2586_v6 = vld [vmem:[#allocation8 + $0xf4] ss:$20 sps:$4 sm:$0xff]   ;;  %898 = vmatpush1.bf16.msra.mxu0 %v2582_v3  ;;  %v2588_v7 = vld [vmem:[#allocation8 + $0xf0] ss:$20 sps:$4 sm:$0xff]   ;;  %v2591_v9 = vld [vmem:[#allocation8 + $0xf8] ss:$20 sps:$4 sm:$0xff]  }
  0xd4   : > { %938 = vmatprep.subr.bf16.mxu1 %v2583_v4  ;;  %899 = vmatprep.subr.bf16.mxu0 %v2586_v6  ;;  %v2592_v10 = vld [vmem:[#allocation8 + $0xcc] ss:$20 sps:$4 sm:$0xff]   ;;  %v2595_v12 = vld [vmem:[#allocation8 + $0xd4] ss:$20 sps:$4 sm:$0xff]   ;;  %v2597_v13 = vld [vmem:[#allocation8 + $0xd0] ss:$20 sps:$4 sm:$0xff]  }
  0xd5   : > { %939 = vmatpush1.bf16.msra.mxu1 %v2585_v5  ;;  %v2598_v14 = vld [vmem:[#allocation8 + $0xa4] ss:$20 sps:$4 sm:$0xff]   ;;  %v2600_v15 = vld [vmem:[#allocation8 + $0xa0] ss:$20 sps:$4 sm:$0xff]   ;;  %v2603_v17 = vld [vmem:[#allocation8 + $0xa8] ss:$20 sps:$4 sm:$0xff]  }
  0xd6   : > { %940 = vmatprep.subr.bf16.mxu1 %v2589_v8  ;;  %v2601_v16 = vld [vmem:[#allocation8 + $0xac] ss:$20 sps:$4 sm:$0xff]   ;;  %v2604_v18 = vld [vmem:[#allocation8 + $0x7c] ss:$20 sps:$4 sm:$0xff]   ;;  %v2607_v20 = vld [vmem:[#allocation8 + $0x84] ss:$20 sps:$4 sm:$0xff]  }
  0xd7   : > { %900 = vmatpush1.bf16.msra.mxu0 %v2588_v7  ;;  %v2606_v19 = vld [vmem:[#allocation8 + $0x78] ss:$20 sps:$4 sm:$0xff]   ;;  %v2609_v21 = vld [vmem:[#allocation8 + $0x80] ss:$20 sps:$4 sm:$0xff]   ;;  %v2613_v23 = vld [vmem:[#allocation8 + $0x5c] ss:$20 sps:$4 sm:$0xff]  }
  0xd8   : > { %901 = vmatprep.subr.bf16.mxu0 %v2592_v10  ;;  %v2610_v22 = vld [vmem:[#allocation8 + $0x54] ss:$20 sps:$4 sm:$0xff]   ;;  %v2612_v24 = vld [vmem:[#allocation8 + $0x50] ss:$20 sps:$4 sm:$0xff]   ;;  %v2615_v25 = vld [vmem:[#allocation8 + $0x58] ss:$20 sps:$4 sm:$0xff]  }
  0xd9   : > { %941 = vmatpush1.bf16.msra.mxu1 %v2591_v9  ;;  %v2616_v26 = vld [vmem:[#allocation8 + $0x2c] ss:$20 sps:$4 sm:$0xff]   ;;  %v2619_v27 = vld [vmem:[#allocation8 + $0x34] ss:$20 sps:$4 sm:$0xff]   ;;  %v2621_v30 = vld [vmem:[#allocation8 + $0x30] ss:$20 sps:$4 sm:$0xff]  }
  0xda   : > { %942 = vmatprep.subr.bf16.mxu1 %v2595_v12  ;;  %v2618_v28 = vld [vmem:[#allocation8 + $0x28] ss:$20 sps:$4 sm:$0xff]   ;;  %v2622_v31 = vld [vmem:[#allocation8 + $0x4] ss:$20 sps:$4 sm:$0xff]   ;;  %v2625_v32 = vld [vmem:[#allocation8 + $0xc] ss:$20 sps:$4 sm:$0xff]  }
  0xdb   : > { %902 = vmatpush1.bf16.msra.mxu0 %v2594_v11  ;;  %v2624_v33 = vld [vmem:[#allocation8] ss:$20 sps:$4 sm:$0xff]   ;;  %v2627_v34 = vld [vmem:[#allocation8 + $0x8] ss:$20 sps:$4 sm:$0xff]   ;;  %v2630_v46 = vld [vmem:[#allocation8 + $0xd8] ss:$20 sps:$4 sm:$0xff]  }
  0xdc   : > { %903 = vmatprep.subr.bf16.mxu0 %v2598_v14  ;;  %v2178_v40 = vld [vmem:[#allocation5] ss:$0 sm:$0xff]  ;;  %v2629_v45 = vld [vmem:[#allocation8 + $0x100] ss:$20 sps:$4 sm:$0xff]   ;;  %v2631_v47 = vld [vmem:[#allocation8 + $0xb0] ss:$20 sps:$4 sm:$0xff]  }
  0xdd   : > { %943 = vmatpush1.bf16.msra.mxu1 %v2597_v13  ;;  %v2628_v43 = vld [vmem:[#allocation8 + $0x128] ss:$20 sps:$4 sm:$0xff]   ;;  %v2633_v49 = vld [vmem:[#allocation8 + $0x60] ss:$20 sps:$4 sm:$0xff]   ;;  %v2634_v50 = vld [vmem:[#allocation8 + $0x38] ss:$20 sps:$4 sm:$0xff]  }
  0xde   : > { %944 = vmatprep.subr.bf16.mxu1 %v2601_v16  ;;  %v2632_v48 = vld [vmem:[#allocation8 + $0x88] ss:$20 sps:$4 sm:$0xff]   ;;  %v2635_v51 = vld [vmem:[#allocation8 + $0x10] ss:$20 sps:$4 sm:$0xff]   ;;  %vm1087_vm1 = vcmask 261120   ;;  %s2303_s27 = sshll.u32 %s3241_s19, 7 }
  0xdf   : > { %904 = vmatpush1.bf16.msra.mxu0 %v2600_v15  ;;  %v1028_v52 = vld [vmem:[#allocation16] sm:$0xff]  ;;  %v1029_v53 = vld [vmem:[#allocation16 + $0x8] sm:$0xff]  ;;  %v1030_v54 = vld [vmem:[#allocation16 + $0x10] sm:$0xff]  ;;  %s621_s25 = scalar_lea.vmem [#allocation20], %s2166_s17  ;;  %s3636_s22 = sld [smem:[#allocation36_spill]] }
  0xe0   : > { %905 = vmatprep.subr.bf16.mxu0 %v2604_v18  ;;  %v1031_v55 = vld [vmem:[#allocation16 + $0x18] sm:$0xff]  ;;  %v1019_v6 = vld [vmem:[%s3579_s7] sm:$0xff]  ;;  %s1985_s28 = sshll.u32 %s621_s25, 4  ;;  %s1971_s9 = scalar_lea.sflag [#allocation4], %s3423_s6  ;;  %s1986_s28 = int_to_ptr.vmem [resolvable:$true] %s1985_s28 }
  0xe1   : > { %945 = vmatpush1.bf16.msra.mxu1 %v2603_v17  ;;  %v1020_v7 = vld [vmem:[#allocation14] sm:$0xff]  ;;  %s3036_s3 = scalar_lea.vmem %s1986_s28, 128  ;;  %p3637_p8 = scmp.ne.s32.totalorder %s3621_s21, 0 }
  0xe2   : > { %946 = vmatprep.subr.bf16.mxu1 %v2607_v20  ;;  %p3037_p5 = scmp.ne.s32.totalorder %s1986_s28, %s3036_s3  ;;  %s3144_s19 = smov [#allocation20]  }
  0xe3   : > { %906 = vmatpush1.bf16.msra.mxu0 %v2606_v19  ;;  %s3040_s17 = sshll.u32 %s3144_s19, 4  ;;  %s3041_s17 = int_to_ptr.vmem [resolvable:$false] %s3040_s17 }
  0xe4   : > { %907 = vmatprep.subr.bf16.mxu0 %v2610_v22  ;;  %p3038_p11 = pnand %p3037_p5, %p3637_p8  ;;  %s3042_s4 = scalar_lea.vmem %s3041_s17, 256 }
  0xe5   : > { %947 = vmatpush1.bf16.msra.mxu1 %v2609_v21  ;;  %s3535_s8 = scalar_lea.hbm %s3636_s22, %s2303_s27  ;;  %p3043_p6 = scmp.lt.s32.totalorder %s1986_s28, %s3041_s17 }
  0xe6   : > { %948 = vmatprep.subr.bf16.mxu1 %v2613_v23  ;;  %p3039_p1 = pneg %p3038_p11  ;;  %p3044_p3 = scmp.lt.s32.totalorder %s3042_s4, %s3036_s3 }
  0xe7   : > { %908 = vmatpush1.bf16.msra.mxu0 %v2612_v24 }
  0xe8   : > { %909 = vmatprep.subr.bf16.mxu0 %v2616_v26  ;;  %v1085_v26 = vld [vmem:[%s3583_s11] sm:$0xff]  ;;  %p3045_p2 = por %p3044_p3, %p3043_p6 }
  0xe9   : > { %949 = vmatpush1.bf16.msra.mxu1 %v2615_v25 }
  0xea   : > { %950 = vmatprep.subr.bf16.mxu1 %v2619_v27  ;;  %p3046_p7 = pnand %p3045_p2, %p3039_p1 }
  0xeb   : > { %910 = vmatpush1.bf16.msra.mxu0 %v2618_v28 }
  0xec   : > { %911 = vmatprep.subr.bf16.mxu0 %v2622_v31 }
  0xed   : > { %951 = vmatpush1.bf16.msra.mxu1 %v2621_v30 }
  0xee   : > { %952 = vmatprep.subr.bf16.mxu1 %v2625_v32 }
  0xef   : > { %912 = vmatpush1.bf16.msra.mxu0 %v2624_v33 }
  0xf0   : > { %2355 = vmatprep.subr.bf16.mxu0 %v3142_v35 }
  0xf1   : > { %953 = vmatpush1.bf16.msra.mxu1 %v2627_v34  ;;  %v1097_v34 = vld [vmem:[#allocation17 + $0x18] sm:$0xff] }
  0xf2   : > { %2375 = vmatprep.subr.bf16.mxu1 %v3142_v35 }
 0x15c   : > { %v626_v36 = vpop.xlane.xlu0 %625 }
 0x15d   : > { %v628_v37 = vmul.f32 0.0078125, %v626_v36  ;;  %v1096_v36 = vld [vmem:[#allocation17 + $0x10] sm:$0xff] }
 0x15f   : > { %v630_v38 = vadd.f32 1e-05, %v628_v37  ;;  %v1095_v37 = vld [vmem:[#allocation17 + $0x8] sm:$0xff] }
 0x161   : > { %2732 = vrsqrt.f32 %v630_v38  ;;  %v1094_v38 = vld [vmem:[#allocation17] sm:$0xff] }
 0x16e   : > { %v2733_v39 = vpop.eup %2732 }
 0x16f   : > { %v632_v41 = vmul.f32 %v2733_v39, %v3453_v0 }
 0x171   : > { %v639_v42 = vmul.f32 %v2178_v40, %v632_v41 }
 0x173   : > { %v3462_v44 = vpack.c.bf16 %v639_v42, %v639_v42 }
 0x175   : > { %930 = vmatmul.mubr.bf16.vlgmr.msra.gmra.mxu0 %v3462_v44  ;;  %971 = vmatmul.mubr.bf16.vlgmr.msra.gmra.mxu1 %v3462_v44 }
 0x176   : > { %2356 = vmatpush3.bf16.msra.mxu0 %v2628_v43  ;;  %2371 = vmatprep.mubr.msk.bf16.mxu0 %vm3143_vm0, %v3142_v35  ;;  %v2636_v43 = vld [vmem:[#allocation10 + $0x38] sm:$0xff]  }
 0x177   : > { %2357 = vmatprep.subr.bf16.mxu0 %v3142_v35  ;;  %2379 = vmatprep.mubr.msk.bf16.mxu1 %vm3143_vm0, %v3142_v35 }
 0x17a   : > { %2358 = vmatpush3.bf16.msra.mxu0 %v2629_v45  ;;  %v2637_v45 = vld [vmem:[#allocation10 + $0x30] sm:$0xff]  }
 0x17b   : > { %2359 = vmatprep.subr.bf16.mxu0 %v3142_v35 }
 0x17e   : > { %2360 = vmatpush3.bf16.msra.mxu0 %v2630_v46  ;;  %v2638_v46 = vld [vmem:[#allocation10 + $0x28] sm:$0xff]  }
 0x17f   : > { %2361 = vmatprep.subr.bf16.mxu0 %v3142_v35 }
 0x182   : > { %2362 = vmatpush3.bf16.msra.mxu0 %v2631_v47  ;;  %v2639_v47 = vld [vmem:[#allocation10 + $0x20] sm:$0xff]  }
 0x183   : > { %2363 = vmatprep.subr.bf16.mxu0 %v3142_v35 }
 0x186   : > { %2364 = vmatpush3.bf16.msra.mxu0 %v2632_v48  ;;  %v2640_v48 = vld [vmem:[#allocation10 + $0x18] sm:$0xff]  }
 0x187   : > { %2365 = vmatprep.subr.bf16.mxu0 %v3142_v35 }
 0x18a   : > { %2366 = vmatpush3.bf16.msra.mxu0 %v2633_v49  ;;  %v2641_v49 = vld [vmem:[#allocation10 + $0x10] sm:$0xff]  }
 0x18b   : > { %2367 = vmatprep.subr.bf16.mxu0 %v3142_v35 }
 0x18e   : > { %2368 = vmatpush3.bf16.msra.mxu0 %v2634_v50  ;;  %v2642_v50 = vld [vmem:[#allocation10 + $0x8] sm:$0xff]  }
 0x18f   : > { %2369 = vmatprep.subr.bf16.mxu0 %v3142_v35 }
 0x192   : > { %2370 = vmatpush3.bf16.msra.mxu0 %v2635_v51 }
 0x193   : > { %2402 = vmatprep.subr.bf16.mxu0 %v3142_v35 }
 0x195   : > { %2372 = vmatmul.mubr.bf16.vlgmr.msra.gmra.mxu0 %v3462_v44 }
 0x196   : > { %2418 = vmatprep.mubr.msk.bf16.mxu0 %vm3143_vm0, %v3142_v35  ;;  %2403 = vmatpush3.bf16.msra.mxu0 %v2636_v43 }
 0x197   : > { %2404 = vmatprep.subr.bf16.mxu0 %v3142_v35 }
 0x19a   : > { %2405 = vmatpush3.bf16.msra.mxu0 %v2637_v45 }
 0x19b   : > { %2406 = vmatprep.subr.bf16.mxu0 %v3142_v35 }
 0x19e   : > { %2407 = vmatpush3.bf16.msra.mxu0 %v2638_v46 }
 0x19f   : > { %2408 = vmatprep.subr.bf16.mxu0 %v3142_v35 }
 0x1a2   : > { %2409 = vmatpush3.bf16.msra.mxu0 %v2639_v47  ;;  %v2692_v47 = vld [vmem:[#allocation13 + $0x78] sm:$0xff]  }
 0x1a3   : > { %2410 = vmatprep.subr.bf16.mxu0 %v3142_v35 }
 0x1a6   : > { %2411 = vmatpush3.bf16.msra.mxu0 %v2640_v48  ;;  %v2693_v48 = vld [vmem:[#allocation13 + $0x38] sm:$0xff]  }
 0x1a7   : > { %2412 = vmatprep.subr.bf16.mxu0 %v3142_v35 }
 0x1aa   : > { %2413 = vmatpush3.bf16.msra.mxu0 %v2641_v49  ;;  %v2694_v49 = vld [vmem:[#allocation13 + $0x70] sm:$0xff]  }
 0x1ab   : > { %2414 = vmatprep.subr.bf16.mxu0 %v3142_v35 }
 0x1ae   : > { %2415 = vmatpush3.bf16.msra.mxu0 %v2642_v50  ;;  %v2695_v50 = vld [vmem:[#allocation13 + $0x30] sm:$0xff]  }
 0x1af   : > { %2416 = vmatprep.subr.bf16.mxu0 %v3142_v35 }
 0x235   : > { %v931_v56 = vpop.f32.mrf.mxu0  ;;  %v972_v57 = vpop.f32.mrf.mxu1 }
 0x236   : > { %v3481_v58 = vmul.f32 %v1028_v52, %v972_v57  ;;  %v3483_v59 = vmul.f32 %v1029_v53, %v972_v57  ;;  %v3485_v60 = vmul.f32 %v1030_v54, %v972_v57  ;;  %v1041_v61 = vmul.f32 %v1031_v55, %v972_v57 }
 0x237   : > { %v933_v62 = vpop.f32.mrf.mxu0  ;;  %v974_v63 = vpop.f32.mrf.mxu1  ;;  %v1021_v22 = vmul.f32 %v1019_v6, %v931_v56  ;;  %v2643_v56 = vld [vmem:[#allocation10] sm:$0xff]  }
 0x238   : > { %v1042_v0 = vpack.c.bf16 %v3483_v59, %v3481_v58  ;;  %v1043_v3 = vpack.c.bf16 %v1041_v61, %v3485_v60  ;;  %v1025_v9 = vmul.f32 %v1019_v6, %v933_v62  ;;  %v1022_v20 = vmul.f32 %v1020_v7, %v974_v63  ;;  %2417 = vmatpush3.bf16.msra.mxu0 %v2643_v56  ;;  %v2644_v61 = vld [vmem:[#allocation11 + $0xe0] ss:$16 sps:$4 sm:$0xff]   ;;  %v2646_v62 = vld [vmem:[#allocation11 + $0xe4] ss:$16 sps:$4 sm:$0xff]   ;;  %v2647_v63 = vld [vmem:[#allocation11 + $0xe8] ss:$16 sps:$4 sm:$0xff]  }
 0x239   : > { %v935_v1 = vpop.f32.mrf.mxu0  ;;  %v976_v2 = vpop.f32.mrf.mxu1  ;;  %v2701_v56 = vld [vmem:[#allocation13 + $0x18] sm:$0xff]  }
 0x23a   : > { %v1023_v23 = vadd.f32 %v1022_v20, %v1021_v22  ;;  %v2652_v1 = vld [vmem:[#allocation11 + $0xc4] ss:$16 sps:$4 sm:$0xff]   ;;  %v2655_v2 = vld [vmem:[#allocation11 + $0xcc] ss:$16 sps:$4 sm:$0xff]   ;;  %v2665_v20 = vld [vmem:[#allocation11 + $0x88] ss:$16 sps:$4 sm:$0xff]  }
 0x23b   : > { %v936_v4 = vpop.f32.mrf.mxu0  ;;  %v977_v5 = vpop.f32.mrf.mxu1  ;;  %v2668_v22 = vld [vmem:[#allocation11 + $0x60] ss:$16 sps:$4 sm:$0xff]  }
 0x23c   : > { %v1024_v24 = vpack.c.bf16 %v1023_v23, %v1023_v23  ;;  %v2653_v4 = vld [vmem:[#allocation11 + $0xc8] ss:$16 sps:$4 sm:$0xff]  }
 0x23d   : > { %v2671_v23 = vld [vmem:[#allocation11 + $0x68] ss:$16 sps:$4 sm:$0xff]  }
 0x255   : > { %v1013_v8 = vpop.f32.mrf.mxu0 }
 0x256   : > { %v1026_v10 = vmul.f32 %v1020_v7, %v1013_v8 }
 0x257   : > { %v2373_v11 = vpop.f32.mrf.mxu0 }
 0x258   : > { %v1027_v12 = vadd.f32 %v1026_v10, %v1025_v9 }
 0x259   : > { %v1016_v13 = vpop.f32.mrf.mxu0 }
 0x25a   : > { %v1034_v14 = vmul.f32 %v1030_v54, %v1027_v12  ;;  %v1035_v15 = vmul.f32 %v1031_v55, %v1027_v12  ;;  %v1032_v18 = vmul.f32 %v1028_v52, %v1027_v12  ;;  %v1033_v19 = vmul.f32 %v1029_v53, %v1027_v12  ;;  %v2658_v13 = vld [vmem:[#allocation11 + $0xa4] ss:$16 sps:$4 sm:$0xff]  }
 0x25b   : > { %v2374_v16 = vpop.f32.mrf.mxu0 }
 0x25c   : > { %v1037_v17 = vpack.c.bf16 %v1035_v15, %v1034_v14  ;;  %v1036_v21 = vpack.c.bf16 %v1033_v19, %v1032_v18  ;;  %v2661_v14 = vld [vmem:[#allocation11 + $0xac] ss:$16 sps:$4 sm:$0xff]   ;;  %v2656_v15 = vld [vmem:[#allocation11 + $0xa0] ss:$16 sps:$4 sm:$0xff]   ;;  %v2659_v16 = vld [vmem:[#allocation11 + $0xa8] ss:$16 sps:$4 sm:$0xff]  }
 0x25d   : > { %v2667_v18 = vld [vmem:[#allocation11 + $0x8c] ss:$16 sps:$4 sm:$0xff]   ;;  %v2662_v19 = vld [vmem:[#allocation11 + $0x80] ss:$16 sps:$4 sm:$0xff]  }
 0x25e   : > { %2376 = vmatpush3.bf16.xpose.msra.mxu1 %v1037_v17  ;;  %v2664_v17 = vld [vmem:[#allocation11 + $0x84] ss:$16 sps:$4 sm:$0xff]  }
 0x25f   : > { %2377 = vmatprep.subr.bf16.mxu1 %v3142_v35 }
 0x266   : > { %2378 = vmatpush3.bf16.xpose.msra.mxu1 %v1036_v21  ;;  %v2673_v21 = vld [vmem:[#allocation11 + $0x6c] ss:$16 sps:$4 sm:$0xff]  }
 0x267   : > { %2383 = vmatprep.subr.mxu1 %v3142_v35 }
 0x26d   : > { %2380 = vmatmul.mubr.bf16.vlgmr.msra.gmra.mxu1 %v1024_v24  ;;  %v2676_v24 = vld [vmem:[#allocation11 + $0x44] ss:$16 sps:$4 sm:$0xff]  }
 0x26e   : > { %2391 = vmatprep.mubr.msk.f32.mxu1 %vm3143_vm0, %v3142_v35  ;;  %2384 = vmatpush3.msra.mxu1 %v1097_v34  ;;  %v2691_v34 = vld [vmem:[#allocation11 + $0xc] ss:$16 sps:$4 sm:$0xff]  }
 0x26f   : > { %2385 = vmatprep.subr.mxu1 %v3142_v35 }
 0x270   : > { %2386 = vmatpush3.msra.mxu1 %v1096_v36  ;;  %v2686_v36 = vld [vmem:[#allocation11] ss:$16 sps:$4 sm:$0xff]  }
 0x271   : > { %2387 = vmatprep.subr.mxu1 %v3142_v35 }
 0x272   : > { %2388 = vmatpush3.msra.mxu1 %v1095_v37  ;;  %v2689_v37 = vld [vmem:[#allocation11 + $0x8] ss:$16 sps:$4 sm:$0xff]  }
 0x273   : > { %2389 = vmatprep.subr.mxu1 %v3142_v35 }
 0x274   : > { %2390 = vmatpush3.msra.mxu1 %v1094_v38 }
 0x275   : > { %2394 = vmatprep.subr.bf16.mxu1 %v3142_v35 }
 0x32d   : > { %v1078_v25 = vpop.f32.mrf.mxu1 }
 0x32e   : > { %v1084_v27 = vmul.f32 0.17677669, %v1078_v25  ;;  %v2679_v25 = vld [vmem:[#allocation11 + $0x4c] ss:$16 sps:$4 sm:$0xff]  }
 0x32f   : > { %v2381_v28 = vpop.f32.mrf.mxu1 }
 0x330   : > { %v1086_v30 = vadd.f32 %v1085_v26, %v1084_v27  ;;  %v2674_v26 = vld [vmem:[#allocation11 + $0x40] ss:$16 sps:$4 sm:$0xff]   ;;  %v2677_v27 = vld [vmem:[#allocation11 + $0x48] ss:$16 sps:$4 sm:$0xff]   ;;  %v2682_v28 = vld [vmem:[#allocation11 + $0x24] ss:$16 sps:$4 sm:$0xff]  }
 0x331   : > { %v1081_v31 = vpop.f32.mrf.mxu1 }
 0x332   : > { %v1088_v32 = vsel %vm1087_vm1, %v1086_v30, -inf  ;;  %v2680_v31 = vld [vmem:[#allocation11 + $0x20] ss:$16 sps:$4 sm:$0xff]  }
 0x333   : > { %1089 = vmax.xlane.f32.xlu0 %v1088_v32  ;;  %v2382_v33 = vpop.f32.mrf.mxu1  ;;  %v2683_v32 = vld [vmem:[#allocation11 + $0x28] ss:$16 sps:$4 sm:$0xff]  }
 0x334   : > { %v2688_v33 = vld [vmem:[#allocation11 + $0x4] ss:$16 sps:$4 sm:$0xff]  }
 0x3bc   : > { %v1090_v39 = vpop.xlane.xlu0 %1089 }
 0x3bd   : > { %v1091_v40 = vsub.f32 %v1086_v30, %v1090_v39  ;;  %v2685_v30 = vld [vmem:[#allocation11 + $0x2c] ss:$16 sps:$4 sm:$0xff]  }
 0x3bf   : > { %v1092_v41 = vmul.f32 1.442695, %v1091_v40 }
 0x3c1   : > { %2734 = vpow2.f32 %v1092_v41 }
 0x3ce   : > { %v2735_v42 = vpop.eup %2734 }
 0x3cf   : > { %2392 = vmatmul.mubr.msk.f32.vlgmr.msra.gmra.mxu1 %vm1087_vm1, %v2735_v42 }
 0x3d0   : > { %2395 = vmatpush3.bf16.msra.mxu1 %v1043_v3  ;;  %2398 = vmatprep.mubr.msk.bf16.mxu1 %vm3143_vm0, %v3142_v35  ;;  %v2650_v3 = vld [vmem:[#allocation11 + $0xc0] ss:$16 sps:$4 sm:$0xff]  }
 0x3d1   : > { %2396 = vmatprep.subr.bf16.mxu1 %v3142_v35 }
 0x3d4   : > { %2397 = vmatpush3.bf16.msra.mxu1 %v1042_v0  ;;  %v2649_v0 = vld [vmem:[#allocation11 + $0xec] ss:$16 sps:$4 sm:$0xff]  }
 0x3d5   : > { %1533 = vmatprep.subr.bf16.mxu1 %v2646_v62  ;;  %1574 = vmatprep.subr.bf16.mxu0 %v2649_v0  ;;  %v2710_v62 = vld [vmem:[#allocation19 + $0x74] ss:$8 sps:$4 sm:$0xff]   ;;  %v2711_v0 = vld [vmem:[#allocation19 + $0x60] ss:$8 sps:$4 sm:$0xff]  }
 0x48f   : > { %v1167_v51 = vpop.f32.mrf.mxu1 }
 0x490   : > { %2736 = vrcp.f32 %v1167_v51  ;;  %v2696_v51 = vld [vmem:[#allocation13 + $0x68] sm:$0xff]  }
 0x491   : > { %v2393_v52 = vpop.f32.mrf.mxu1 }
 0x492   : > { %v2697_v52 = vld [vmem:[#allocation13 + $0x28] sm:$0xff]  }
 0x49d   : > { %v2737_v53 = vpop.eup %2736 }
 0x49e   : > { %v1172_v54 = vmul.f32 %v2737_v53, %v2735_v42  ;;  %v2229_v42 = vld [vmem:[#allocation7] ss:$0 sm:$0xff]  ;;  %v2698_v53 = vld [vmem:[#allocation13 + $0x60] sm:$0xff]  }
 0x4a0   : > { %v1173_v55 = vpack.c.bf16 %v1172_v54, %v1172_v54  ;;  %v2699_v54 = vld [vmem:[#allocation13 + $0x20] sm:$0xff]  }
 0x4a2   : > { %2399 = vmatmul.mubr.msk.bf16.vlgmr.msra.gmra.mxu1 %vm1087_vm1, %v1173_v55  ;;  %v2700_v55 = vld [vmem:[#allocation13 + $0x58] sm:$0xff]  }
 0x4a3   : > { %1565 = vmatprep.mubr.bf16.mxu1 %v3141_v29  ;;  %1534 = vmatpush1.bf16.msra.mxu1 %v2644_v61  ;;  %v2708_v61 = vld [vmem:[#allocation19 + $0x70] ss:$8 sps:$4 sm:$0xff]  }
 0x4a4   : > { %1535 = vmatprep.subr.bf16.mxu1 %v2652_v1  ;;  %v2716_v1 = vld [vmem:[#allocation19 + $0x54] ss:$8 sps:$4 sm:$0xff]  }
 0x4a7   : > { %1536 = vmatpush1.bf16.msra.mxu1 %v2650_v3  ;;  %v2719_v3 = vld [vmem:[#allocation19 + $0x44] ss:$8 sps:$4 sm:$0xff]  }
 0x4a8   : > { %1537 = vmatprep.subr.bf16.mxu1 %v2658_v13 }
 0x4ab   : > { %1538 = vmatpush1.bf16.msra.mxu1 %v2656_v15 }
 0x4ac   : > { %1539 = vmatprep.subr.bf16.mxu1 %v2664_v17 }
 0x4af   : > { %1540 = vmatpush1.bf16.msra.mxu1 %v2662_v19 }
 0x562   : > { %v1211_v57 = vpop.f32.mrf.mxu1 }
 0x563   : > { %v1217_v58 = vpack.c.bf16 %v1211_v57, %v1211_v57  ;;  %v2703_v57 = vld [vmem:[#allocation13 + $0x10] sm:$0xff]  }
 0x564   : > { %v2400_v59 = vpop.f32.mrf.mxu1 }
 0x565   : > { %2419 = vmatmul.mubr.bf16.vlgmr.msra.gmra.mxu0 %v1217_v58  ;;  %v2704_v58 = vld [vmem:[#allocation13 + $0x48] sm:$0xff]  }
 0x566   : > { %v1214_v60 = vpop.f32.mrf.mxu1  ;;  %1606 = vmatprep.mubr.bf16.mxu0 %v3141_v29  ;;  %1575 = vmatpush1.bf16.msra.mxu0 %v2647_v63  ;;  %v2705_v59 = vld [vmem:[#allocation13 + $0x8] sm:$0xff]  }
 0x567   : > { %1576 = vmatprep.subr.bf16.mxu0 %v2655_v2  ;;  %v2706_v60 = vld [vmem:[#allocation13 + $0x40] sm:$0xff]   ;;  %v2713_v63 = vld [vmem:[#allocation19 + $0x64] ss:$8 sps:$4 sm:$0xff]  }
 0x568   : > { %v2401_v35 = vpop.f32.mrf.mxu1  ;;  %v2714_v2 = vld [vmem:[#allocation19 + $0x50] ss:$8 sps:$4 sm:$0xff]  }
 0x569   : > { %v2707_v35 = vld [vmem:[#allocation13] sm:$0xff]  }
 0x56a   : > { %1577 = vmatpush1.bf16.msra.mxu0 %v2653_v4  ;;  %v2717_v4 = vld [vmem:[#allocation19 + $0x40] ss:$8 sps:$4 sm:$0xff]  }
 0x56b   : > { %1578 = vmatprep.subr.bf16.mxu0 %v2661_v14 }
 0x56e   : > { %1579 = vmatpush1.bf16.msra.mxu0 %v2659_v16 }
 0x56f   : > { %1580 = vmatprep.subr.bf16.mxu0 %v2667_v18 }
 0x572   : > { %1581 = vmatpush1.bf16.msra.mxu0 %v2665_v20 }
 0x573   : > { %1582 = vmatprep.subr.bf16.mxu0 %v2673_v21 }
 0x576   : > { %1583 = vmatpush1.bf16.msra.mxu0 %v2671_v23 }
 0x577   : > { %1584 = vmatprep.subr.bf16.mxu0 %v2679_v25 }
 0x57a   : > { %1585 = vmatpush1.bf16.msra.mxu0 %v2677_v27 }
 0x57b   : > { %1586 = vmatprep.subr.bf16.mxu0 %v2685_v30 }
 0x57e   : > { %1587 = vmatpush1.bf16.msra.mxu0 %v2683_v32  ;;  %v2728_v32 = vld [vmem:[#allocation19 + $0x14] ss:$8 sps:$4 sm:$0xff]  }
 0x57f   : > { %1588 = vmatprep.subr.bf16.mxu0 %v2691_v34  ;;  %v2729_v34 = vld [vmem:[#allocation19] ss:$8 sps:$4 sm:$0xff]  }
 0x582   : > { %1589 = vmatpush1.bf16.msra.mxu0 %v2689_v37 }
 0x583   : > { %1920 = vmatprep.subr.bf16.mxu0 %v2710_v62 }
 0x625   : > { %v1316_v5 = vpop.f32.mrf.mxu0 }
 0x626   : > { %v1322_v6 = vpack.c.bf16 %v1316_v5, %v1316_v5  ;;  %v2722_v5 = vld [vmem:[#allocation19 + $0x34] ss:$8 sps:$4 sm:$0xff]  }
 0x627   : > { %v2420_v7 = vpop.f32.mrf.mxu0 }
 0x628   : > { %v1323_v8 = vadd.bf16 %v1322_v6, %v3462_v44  ;;  %v2670_v44 = vld [vmem:[#allocation11 + $0x64] ss:$16 sps:$4 sm:$0xff]   ;;  %v2720_v6 = vld [vmem:[#allocation19 + $0x30] ss:$8 sps:$4 sm:$0xff]  }
 0x629   : > { %v1319_v9 = vpop.f32.mrf.mxu0  ;;  %1541 = vmatprep.subr.bf16.mxu1 %v2670_v44  ;;  %v2725_v7 = vld [vmem:[#allocation19 + $0x24] ss:$8 sps:$4 sm:$0xff]  }
 0x62a   : > { %v1324_v10 = vunpack.c.l.bf16 %v1323_v8  ;;  %1542 = vmatpush1.bf16.msra.mxu1 %v2668_v22  ;;  %v2723_v8 = vld [vmem:[#allocation19 + $0x20] ss:$8 sps:$4 sm:$0xff]  }
 0x62b   : > { %v2421_v11 = vpop.f32.mrf.mxu0  ;;  %1543 = vmatprep.subr.bf16.mxu1 %v2676_v24 }
 0x62c   : > { %v1325_v12 = vmul.f32 %v1324_v10, %v1324_v10 }
 0x62e   : > { %1326 = vadd.xlane.f32.xlu1 %v1325_v12  ;;  %1544 = vmatpush1.bf16.msra.mxu1 %v2674_v26 }
 0x62f   : > { %1545 = vmatprep.subr.bf16.mxu1 %v2682_v28 }
 0x632   : > { %1546 = vmatpush1.bf16.msra.mxu1 %v2680_v31  ;;  %v2726_v31 = vld [vmem:[#allocation19 + $0x10] ss:$8 sps:$4 sm:$0xff]  }
 0x633   : > { %1547 = vmatprep.subr.bf16.mxu1 %v2688_v33  ;;  %v2731_v33 = vld [vmem:[#allocation19 + $0x4] ss:$8 sps:$4 sm:$0xff]  }
 0x636   : > { %1548 = vmatpush1.bf16.msra.mxu1 %v2686_v36 }
 0x637   : > { %2333 = vmatprep.subr.bf16.mxu1 %v2692_v47  ;;  %v1819_v47 = vld [vmem:[%s3585_s13] sm:$0x3] }
 0x6b7   : > { %v1327_v38 = vpop.xlane.xlu1 %1326 }
 0x6b8   : > { %v1328_v39 = vmul.f32 0.0078125, %v1327_v38 }
 0x6ba   : > { %v1330_v40 = vadd.f32 1e-05, %v1328_v39 }
 0x6bc   : > { %2738 = vrsqrt.f32 %v1330_v40 }
 0x6c9   : > { %v2739_v41 = vpop.eup %2738 }
 0x6ca   : > { %v1332_v43 = vmul.f32 %v2739_v41, %v1324_v10 }
 0x6cc   : > { %v1339_v45 = vmul.f32 %v2229_v42, %v1332_v43  ;;  %v1822_v43 = vlaneseq }
 0x6ce   : > { %v3520_v46 = vpack.c.bf16 %v1339_v45, %v1339_v45  ;;  %v1823_v45 = vshrl.u32 %v1822_v43, 7 }
 0x6d0   : > { %1566 = vmatmul.mubr.bf16.vlgmr.msra.gmra.mxu1 %v3520_v46  ;;  %1607 = vmatmul.mubr.bf16.vlgmr.msra.gmra.mxu0 %v3520_v46 }
 0x6d1   : > { %1952 = vmatprep.mubr.bf16.mxu0 %v3141_v29  ;;  %2334 = vmatpush3.bf16.msra.mxu1 %v2693_v48  ;;  %v2702_v29 = vld [vmem:[#allocation13 + $0x50] sm:$0xff]   ;;  %v1820_v48 = vunpack.c.l.bf16 %v1819_v47 }
 0x6d2   : > { %2335 = vmatprep.subr.bf16.mxu1 %v2694_v49  ;;  %1921 = vmatpush1.bf16.msra.mxu0 %v2708_v61  ;;  %v1824_v49 = vsub.s32 0, %v1823_v45 }
 0x6d3   : > { %1922 = vmatprep.subr.bf16.mxu0 %v2713_v63 }
 0x6d5   : > { %2336 = vmatpush3.bf16.msra.mxu1 %v2695_v50  ;;  %v1828_v50 = vsub.s32 2, %v1823_v45 }
 0x6d6   : > { %2337 = vmatprep.subr.bf16.mxu1 %v2696_v51  ;;  %1923 = vmatpush1.bf16.msra.mxu0 %v2711_v0  ;;  %v1825_v51 = vrot.slane %v1820_v48, %v1824_v49 }
 0x6d7   : > { %1924 = vmatprep.subr.bf16.mxu0 %v2716_v1 }
 0x6d9   : > { %2338 = vmatpush3.bf16.msra.mxu1 %v2697_v52  ;;  %v1829_v52 = vrot.slane %v1820_v48, %v1828_v50 }
 0x6da   : > { %2339 = vmatprep.subr.bf16.mxu1 %v2698_v53  ;;  %1925 = vmatpush1.bf16.msra.mxu0 %v2714_v2  ;;  %v1835_v53 = vrot.slane %v1825_v51, %v1824_v49 }
 0x6db   : > { %1926 = vmatprep.subr.bf16.mxu0 %v2719_v3 }
 0x6dd   : > { %2340 = vmatpush3.bf16.msra.mxu1 %v2699_v54  ;;  %v1839_v54 = vrot.slane %v1829_v52, %v1824_v49 }
 0x6de   : > { %2341 = vmatprep.subr.bf16.mxu1 %v2700_v55  ;;  %1927 = vmatpush1.bf16.msra.mxu0 %v2717_v4 }
 0x6df   : > { %1928 = vmatprep.subr.bf16.mxu0 %v2722_v5 }
 0x6e1   : > { %2342 = vmatpush3.bf16.msra.mxu1 %v2701_v56 }
 0x6e2   : > { %2343 = vmatprep.subr.bf16.mxu1 %v2702_v29  ;;  %1929 = vmatpush1.bf16.msra.mxu0 %v2720_v6 }
 0x6e3   : > { %1930 = vmatprep.subr.bf16.mxu0 %v2725_v7 }
 0x6e5   : > { %2344 = vmatpush3.bf16.msra.mxu1 %v2703_v57 }
 0x6e6   : > { %2345 = vmatprep.subr.bf16.mxu1 %v2704_v58  ;;  %1931 = vmatpush1.bf16.msra.mxu0 %v2723_v8 }
 0x6e7   : > { %1932 = vmatprep.subr.bf16.mxu0 %v2728_v32 }
 0x6e9   : > { %2346 = vmatpush3.bf16.msra.mxu1 %v2705_v59 }
 0x6ea   : > { %2347 = vmatprep.subr.bf16.mxu1 %v2706_v60  ;;  %1933 = vmatpush1.bf16.msra.mxu0 %v2726_v31 }
 0x6eb   : > { %1934 = vmatprep.subr.bf16.mxu0 %v2731_v33 }
 0x6ed   : > { %2348 = vmatpush3.bf16.msra.mxu1 %v2707_v35 }
 0x6ee   : > { %1935 = vmatpush1.bf16.msra.mxu0 %v2729_v34 }
 0x790   : > { %v1567_v9 = vpop.f32.mrf.mxu1  ;;  %v1608_v10 = vpop.f32.mrf.mxu0 }
 0x791   : > { %v2262_v11 = vmul.f32 -1.442695, %v1567_v9 }
 0x792   : > { %v1569_v12 = vpop.f32.mrf.mxu1  ;;  %v1610_v13 = vpop.f32.mrf.mxu0 }
 0x793   : > { %2740 = vpow2.f32 %v2262_v11  ;;  %v2263_v14 = vmul.f32 -1.442695, %v1569_v12 }
 0x794   : > { %v1571_v15 = vpop.f32.mrf.mxu1  ;;  %v1612_v16 = vpop.f32.mrf.mxu0 }
 0x795   : > { %2742 = vpow2.f32 %v2263_v14 }
 0x796   : > { %v1572_v17 = vpop.f32.mrf.mxu1  ;;  %v1613_v18 = vpop.f32.mrf.mxu0 }
 0x7a0   : > { %v2741_v19 = vpop.eup %2740 }
 0x7a1   : > { %v1621_v20 = vadd.f32 1.0, %v2741_v19 }
 0x7a2   : > { %v2743_v44 = vpop.eup %2742 }
 0x7a3   : > { %2744 = vrcp.f32 %v1621_v20  ;;  %v1622_v21 = vadd.f32 1.0, %v2743_v44 }
 0x7a5   : > { %2746 = vrcp.f32 %v1622_v21 }
 0x7b0   : > { %v2745_v22 = vpop.eup %2744 }
 0x7b1   : > { %v1627_v23 = vmul.f32 %v2745_v22, %v1567_v9 }
 0x7b2   : > { %v2747_v24 = vpop.eup %2746 }
 0x7b3   : > { %v1628_v25 = vmul.f32 %v2747_v24, %v1569_v12  ;;  %v1629_v26 = vmul.f32 %v1627_v23, %v1608_v10 }
 0x7b5   : > { %v1630_v27 = vmul.f32 %v1628_v25, %v1610_v13  ;;  %v1631_v30 = vpack.c.bf16 %v1629_v26, %v1629_v26 }
 0x7b7   : > { %v1632_v28 = vpack.c.bf16 %v1630_v27, %v1630_v27 }
 0x7b9   : > { %1793 = vmatprep.mubr.bf16.mxu1 %v1632_v28 }
 0x7ba   : > { %1794 = vmatmul.mubr.bf16.vlgmr.msra.gmra.mxu1 %v1631_v30 }
 0x87a   : > { %v2349_v36 = vpop.f32.mrf.mxu1 }
 0x87c   : > { %v2350_v37 = vpop.f32.mrf.mxu1 }
 0x87d   : > { %v2351_v38 = vadd.f32 %v2350_v37, %v2349_v36 }
 0x87e   : > { %v2352_v39 = vpop.f32.mrf.mxu1 }
 0x87f   : > { %v1801_v40 = vpack.c.bf16 %v2351_v38, %v2351_v38 }
 0x880   : > { %v2353_v41 = vpop.f32.mrf.mxu1 }
 0x881   : > { %v1802_v42 = vadd.bf16 %v1801_v40, %v3520_v46 }
 0x883   : > { %1953 = vmatmul.mubr.bf16.vlgmr.msra.gmra.mxu0 %v1802_v42 }
 0x943   : > { %v1954_v55 = vpop.f32.mrf.mxu0 }
 0x944   : > { %v1955_v46 = vadd.f32 %v1954_v55, %v1835_v53 }
 0x945   : > { %v1956_v56 = vpop.f32.mrf.mxu0 }
 0x946   : > { %v1957_v29 = vadd.f32 %v1956_v56, %v1839_v54 }
 0x947   : > { %v1958_v57 = vpop.f32.mrf.mxu0 }
 0x948   : > { %v2302_v58 = vpack.c.bf16 %v1957_v29, %v1955_v46 }
 0x949   : > { %v1959_v59 = vpop.f32.mrf.mxu0 }
 0x94a   : > { %1969 = vst [vmem:[%s621_s25] sm:$0xff] %v2302_v58 }
 0x94b   : > { %3049 = shalt.err (!%p3046_p7)
}
 0x94c   : > { %s3050_s5 = scalar_lea.hbm %s3535_s8, 128  ;;  %s3054_s2 = scalar_lea.hbm %s3636_s22, 256 }
 0x94d   : > { %p3051_p9 = scmp.ne.s32.totalorder %s3535_s8, %s3050_s5  ;;  %p3055_p12 = scmp.lt.s32.totalorder %s3535_s8, %s3636_s22 }
 0x94e   : > { %p3056_p13 = scmp.lt.s32.totalorder %s3054_s2, %s3050_s5 }
 0x94f   : > { %p3052_p10 = pnand %p3051_p9, %p3637_p8 }
 0x950   : > { %p3057_p0 = por %p3056_p13, %p3055_p12 }
 0x951   : > { %p3053_p4 = pneg %p3052_p10 }
 0x953   : > { %p3058_p5 = pnand %p3057_p0, %p3053_p4 }
 0x955   : > { %3061 = shalt.err (!%p3058_p5)
}
 0x956   : > { %2464 = dma.vmem_to_hbm [thread:$0]  (%p3637_p8), %s1986_s28, 128, %s3535_s8, %s1971_s9  }
 0x957 PF: > { %s1997_s25 = sand.u32 1, %s3108_s29   ;;  %p3638_p11 = scmp.ne.s32.totalorder %s3622_s1, 0 }
 0x958   : > { %p3639_p1 = scmp.ge.s32.totalorder %s3120_s16, 2  ;;  %s1998_s23 = scalar_lea.sflag [#allocation4], %s1997_s25 }
 0x95a   : > { %p2502_p6 = pnand %p3639_p1, %p3638_p11 }
 0x95c   : > { %p2503_p3 = pneg %p2502_p6 }
 0x95e   : > { %3103 = dma.done.wait (%p2503_p3), %s1998_s23, 128  }
 0x95f   : > { %3105 = vsyncadd (%p2503_p3), %s1998_s23, 4294967168  ;;  %p32_p2 = scmp.ge.s32.totalorder %s3360_s26, 4   ;;  %s3640_s29 = smov %s3112_s30 }
 0x960   : > { %s3641_s30 = smov %s3116_s15  ;;  %s3642_s15 = smov %s3371_s24 }
 0x961   : > { %s3643_s16 = smov %s3360_s26  ;;  %34 = sbr.rel (!%p32_p2) target bundleno = 20 (0x14), region = 161 }
 0x966   :  { %2003 = vsyncpa [#allocation3], 1 }
 0x967   :  { %2005 = vsyncpa [#allocation3 + $0x1], 1 }
 0x968   :  { %2006 = vsyncpa [#allocation6], 1 }
 0x969   :  { %2007 = vsyncpa [#allocation9], 1 }
 0x96a   :  { %2008 = vsyncpa [#allocation12], 1 }
 0x96b   :  { %2009 = vsyncpa [#allocation15], 1 }
 0x96c   :  { %2010 = vsyncpa [#allocation18], 1 }
 0x96d   :  { %2011 = vsyncpa [#allocation4], 1 }
 0x96e   :  { %2013 = vsyncpa [#allocation4 + $0x1], 1 }

</bundles_post_ra>
